<compile_context>
chip_gen: v7x
topology: tpu7x:2x2x1
jax: 0.10.0
libtpu: 0.0.40
codegen_flags: <defaults>
</compile_context>

<pallas_src>
import jax
import jax.numpy as jnp
import numpy as np
from jax.experimental import pallas as pl
from jax.experimental.pallas import tpu as pltpu

# ----------------------------- configuration --------------------------------
IN_CHANNELS = 64               # self.in_channels
GRU_HIDDEN = 64                # waypoint_config['gru_hidden_size'] (== join output width)
PRED_LEN = 4                   # waypoint_config['pred_len']
GRU_CONCAT_TARGET_POINT = True # waypoint_config['gru_concat_target_point']
GRU_IN = 6 if GRU_CONCAT_TARGET_POINT else 3

_C = IN_CHANNELS
_H = GRU_HIDDEN
# join MLP: Linear(C,C) -> Linear(C,256) -> Linear(256,128) -> Linear(128,64)
_J_IN = (_C, _C, 256, 128)
_J_OUT = (_C, 256, 128, _H)


def _align8(n):
    return (n + 7) // 8 * 8


# ---- join slab row offsets (lane width _LJ; every piece starts 8-aligned) ----
_LJ = max(_J_OUT)                       # 256
_JW1 = 0
_JW2 = _JW1 + _align8(_J_IN[0])         # 64
_JW3 = _JW2 + _align8(_J_IN[1])         # 128
_JW4 = _JW3 + _align8(_J_IN[2])         # 384
_JB1 = _JW4 + _align8(_J_IN[3])         # 512
_JB2 = _JB1 + 8
_JB3 = _JB2 + 8
_JB4 = _JB3 + 8
_JOIN_ROWS = _JB4 + 8                   # 544

# ---- GRU+output slab row offsets (lane width _LG = 3*H) ----------------------
_LG = 3 * _H                            # 192
_GWH = 0                                # (H, 3H)  hidden weights  [r|z|n]
_GWIX = _GWH + _align8(_H)              # (3, 3H)  input weights, x rows
_GWIG = _GWIX + 8                       # (3, 3H)  input weights, goal rows
_GBI = _GWIG + 8                        # (1, 3H)  b_i[r|z|n] + b_h[r|z|0] (folded)
_GBH = _GBI + 8                         # (1, 3H)  b_h[r|z|n] (only the n lanes are used)
_GWO1 = _GBH + 8                        # (H, 4)   output Linear(H,4)
_GBO1 = _GWO1 + _align8(_H)             # (1, 4)
_GW23 = _GBO1 + 8                       # (4, 3)   fused Linear(4,4)·Linear(4,3)
_GB23 = _GW23 + 8                       # (1, 3)
_GRU_ROWS = _GB23 + 8                   # 184


# ------------------------------ Pallas kernel --------------------------------
def imitation_kernel(feat_ref, goal_ref, join_ref, gru_ref, out_ref):
    # feat_ref: (B, C, H*W)   goal_ref: (B, 3)
    # join_ref: (_JOIN_ROWS, _LJ) f32 slab   gru_ref: (_GRU_ROWS, _LG) f32 slab
    # out_ref : (B, PRED_LEN*3) f32

    # ---------------- AdaptiveAvgPool2d(1): lane-axis mean -------------------
    z = jnp.mean(feat_ref[...].astype(jnp.float32), axis=-1)         # (B, C)

    # ---------------- join MLP: Linear+ReLU x4 (static slab slices) ----------
    w1 = join_ref[_JW1:_JW1 + _J_IN[0], 0:_J_OUT[0]]
    w2 = join_ref[_JW2:_JW2 + _J_IN[1], 0:_J_OUT[1]]
    w3 = join_ref[_JW3:_JW3 + _J_IN[2], 0:_J_OUT[2]]
    w4 = join_ref[_JW4:_JW4 + _J_IN[3], 0:_J_OUT[3]]
    b1 = join_ref[_JB1:_JB1 + 1, 0:_J_OUT[0]]
    b2 = join_ref[_JB2:_JB2 + 1, 0:_J_OUT[1]]
    b3 = join_ref[_JB3:_JB3 + 1, 0:_J_OUT[2]]
    b4 = join_ref[_JB4:_JB4 + 1, 0:_J_OUT[3]]
    z = jnp.maximum(jnp.dot(z, w1, preferred_element_type=jnp.float32) + b1, 0.0)
    z = jnp.maximum(jnp.dot(z, w2, preferred_element_type=jnp.float32) + b2, 0.0)
    z = jnp.maximum(jnp.dot(z, w3, preferred_element_type=jnp.float32) + b3, 0.0)
    h = jnp.maximum(jnp.dot(z, w4, preferred_element_type=jnp.float32) + b4, 0.0)   # (B, H)

    # ---------------- GRU rollout (gate-packed weights [r|z|n]) --------------
    goal = goal_ref[...]                                              # (B, 3)
    B = goal.shape[0]
    Wh = gru_ref[_GWH:_GWH + _H, :]                                   # (H, 3H)
    Wix = gru_ref[_GWIX:_GWIX + 3, :]                                 # (3, 3H)
    Wig = gru_ref[_GWIG:_GWIG + 3, :]                                 # (3, 3H)
    Bi = gru_ref[_GBI:_GBI + 1, :]                                    # (1, 3H) with b_h r/z folded
    Bhn = gru_ref[_GBH:_GBH + 1, 2 * _H:]                             # (1, H)   hidden bias of n gate
    Wo1 = gru_ref[_GWO1:_GWO1 + _H, 0:4]                              # (H, 4)
    Bo1 = gru_ref[_GBO1:_GBO1 + 1, 0:4]                               # (1, 4)
    W23 = gru_ref[_GW23:_GW23 + 4, 0:3]                               # (4, 3)
    B23 = gru_ref[_GB23:_GB23 + 1, 0:3]                               # (1, 3)

    # Loop-invariant: goal-point contribution (constant over the rollout) plus
    # all constant bias terms, folded into one (B, 3H) tensor.
    bias_i = jnp.dot(goal, Wig, preferred_element_type=jnp.float32) + Bi

    x = jnp.zeros((B, 3), dtype=jnp.float32)
    wps = []
    for _ in range(PRED_LEN):                         # static, tiny trip count
        # 2 MXU pushes per step for the whole gate block (r|z|n lane-packed)
        gi = jnp.dot(x, Wix, preferred_element_type=jnp.float32) + bias_i    # (B, 3H)
        gh = jnp.dot(h, Wh, preferred_element_type=jnp.float32)              # (B, 3H)
        rz = jax.nn.sigmoid(gi[:, :2 * _H] + gh[:, :2 * _H])                 # (B, 2H)
        r, u = rz[:, :_H], rz[:, _H:]
        n = jnp.tanh(gi[:, 2 * _H:] + r * (gh[:, 2 * _H:] + Bhn))
        h = (1.0 - u) * n + u * h                                            # GRUCell update
        # output MLP: ReLU layer + offline-fused Linear(4,4)·Linear(4,3)
        y = jnp.maximum(jnp.dot(h, Wo1, preferred_element_type=jnp.float32) + Bo1, 0.0)  # (B, 4)
        x = jnp.dot(y, W23, preferred_element_type=jnp.float32) + B23 + x                 # (B, 3)
        wps.append(x)

    # single store of all waypoints (lane concat); wrapper reshape is free
    out_ref[...] = jnp.concatenate(wps, axis=-1)      # (B, PRED_LEN*3)


# ---------------------------- offline weight packing --------------------------
def pack_params(params):
    """Pack the 26 per-layer tensors into two f32 VMEM slabs (model-load time).
    Also fuses the bias-free Linear(4,4)·Linear(4,3) pair of the output MLP and
    folds the r/z hidden-gate biases into the input-side bias row."""
    (w1, b1, w2, b2, w3, b3, w4, b4,
     wir, wiz, win, whr, whz, whn,
     bir, biz, bin_, bhr, bhz, bhn,
     wo1, bo1, wo2, bo2, wo3, bo3) = [np.asarray(p, np.float32) for p in params]

    def put(slab, row, a):
        slab[row:row + a.shape[0], :a.shape[1]] = a

    join = np.zeros((_JOIN_ROWS, _LJ), np.float32)
    put(join, _JW1, w1); put(join, _JW2, w2); put(join, _JW3, w3); put(join, _JW4, w4)
    put(join, _JB1, b1); put(join, _JB2, b2); put(join, _JB3, b3); put(join, _JB4, b4)

    gru = np.zeros((_GRU_ROWS, _LG), np.float32)
    wh_all = np.concatenate([whr, whz, whn], axis=1)                  # (H, 3H)
    wi_all = np.concatenate([wir, wiz, win], axis=1)                  # (GRU_IN, 3H)
    bi_all = np.concatenate([bir, biz, bin_], axis=1)                 # (1, 3H)
    bh_all = np.concatenate([bhr, bhz, bhn], axis=1)                  # (1, 3H)
    # fold b_h of the r/z gates into the input bias (only their sum matters);
    # b_hn stays separate because it is gated by r.
    bi_folded = bi_all + np.concatenate([bhr, bhz, np.zeros_like(bhn)], axis=1)
    w23 = wo2 @ wo3                                                   # (4, 3) fused offline
    b23 = bo2 @ wo3 + bo3                                             # (1, 3)

    put(gru, _GWH, wh_all)
    put(gru, _GWIX, wi_all[:3])
    if GRU_CONCAT_TARGET_POINT:
        put(gru, _GWIG, wi_all[3:6])                                  # goal part of W_i
    put(gru, _GBI, bi_folded)
    put(gru, _GBH, bh_all)
    put(gru, _GWO1, wo1); put(gru, _GBO1, bo1)
    put(gru, _GW23, w23); put(gru, _GB23, b23)
    return jnp.asarray(join), jnp.asarray(gru)


# ------------------------------- wrapper --------------------------------------
def imitation_head_forward(z_feat, goal_point, goal_point_speed, packed):
    """z_feat: (B, C, H, W) NCHW backbone feature; packed = pack_params(raw)."""
    join_slab, gru_slab = packed
    B, C, H, W = z_feat.shape
    feat = z_feat.reshape(B, C, H * W)                # keep backbone dtype; cast in-kernel
    goal = jnp.stack(
        [goal_point[:, 0, 3], goal_point[:, 1, 3], goal_point_speed], axis=1
    ).astype(jnp.float32)                             # (B, 3)

    # TODO(synk): for production-sized feature maps / batches, tile feat with a
    # ("parallel",) batch grid (+ an accumulating spatial axis for the pooling)
    # instead of the single full-array VMEM block used for these toy shapes.
    out = pl.pallas_call(
        imitation_kernel,
        out_shape=jax.ShapeDtypeStruct((B, PRED_LEN * 3), jnp.float32),
        in_specs=[pl.BlockSpec(memory_space=pltpu.MemorySpace.VMEM)] * 4,
        out_specs=pl.BlockSpec(memory_space=pltpu.MemorySpace.VMEM),
    )(feat, goal, join_slab, gru_slab)
    return out.reshape(B, PRED_LEN, 3)                # row-major reshape, no transpose


# --------------------------- reference (pure JAX) ------------------------------
def reference_forward(z_feat, goal_point, goal_point_speed, params):
    (w1, b1, w2, b2, w3, b3, w4, b4,
     wir, wiz, win, whr, whz, whn,
     bir, biz, bin_, bhr, bhz, bhn,
     wo1, bo1, wo2, bo2, wo3, bo3) = params
    B, C, H, W = z_feat.shape
    z = z_feat.reshape(B, C, H * W).astype(jnp.float32).mean(-1)
    z = jax.nn.relu(z @ w1 + b1)
    z = jax.nn.relu(z @ w2 + b2)
    z = jax.nn.relu(z @ w3 + b3)
    h = jax.nn.relu(z @ w4 + b4)
    goal = jnp.stack([goal_point[:, 0, 3], goal_point[:, 1, 3], goal_point_speed], axis=1)
    x = jnp.zeros((B, 3), jnp.float32)
    wps = []
    for _ in range(PRED_LEN):
        x_in = jnp.concatenate([x, goal], axis=1) if GRU_CONCAT_TARGET_POINT else x
        r = jax.nn.sigmoid(x_in @ wir + bir + h @ whr + bhr)
        u = jax.nn.sigmoid(x_in @ wiz + biz + h @ whz + bhz)
        n = jnp.tanh(x_in @ win + bin_ + r * (h @ whn + bhn))
        h = (1.0 - u) * n + u * h
        y = jax.nn.relu(h @ wo1 + bo1)
        y = y @ wo2 + bo2
        dx = y @ wo3 + bo3
        x = dx + x
        wps.append(x)
    return jnp.stack(wps, axis=1)


# ------------------------------ param init -------------------------------------
def make_params(key):
    def lin(k, fan_in, fan_out):
        kw, kb = jax.random.split(k)
        bound = 1.0 / np.sqrt(fan_in)
        w = jax.random.uniform(kw, (fan_in, fan_out), jnp.float32, -bound, bound)
        b = jax.random.uniform(kb, (1, fan_out), jnp.float32, -bound, bound)
        return w, b

    ks = jax.random.split(key, 14)
    C, H = IN_CHANNELS, GRU_HIDDEN
    w1, b1 = lin(ks[0], C, C)
    w2, b2 = lin(ks[1], C, 256)
    w3, b3 = lin(ks[2], 256, 128)
    w4, b4 = lin(ks[3], 128, 64)
    # GRUCell weights, split per-gate (reset / update / new), stored (in, out)
    wir, bir = lin(ks[4], GRU_IN, H)
    wiz, biz = lin(ks[5], GRU_IN, H)
    win, bin_ = lin(ks[6], GRU_IN, H)
    whr, bhr = lin(ks[7], H, H)
    whz, bhz = lin(ks[8], H, H)
    whn, bhn = lin(ks[9], H, H)
    # output MLP
    wo1, bo1 = lin(ks[10], H, 4)
    wo2, bo2 = lin(ks[11], 4, 4)
    wo3, bo3 = lin(ks[12], 4, 3)
    return (w1, b1, w2, b2, w3, b3, w4, b4,
            wir, wiz, win, whr, whz, whn,
            bir, biz, bin_, bhr, bhz, bhn,
            wo1, bo1, wo2, bo2, wo3, bo3)


# --------------------------------- main -----------------------------------------
if __name__ == "__main__":
    key = jax.random.PRNGKey(0)
    k_feat, k_goal, k_speed, k_params = jax.random.split(key, 4)

    B, SP = 2, 8
    z_feat = jax.random.normal(k_feat, (B, IN_CHANNELS, SP, SP), jnp.float32)
    goal_point = jax.random.normal(k_goal, (B, 4, 4), jnp.float32)        # 4x4 pose matrix
    goal_point_speed = jax.random.normal(k_speed, (B,), jnp.float32)
    params = make_params(k_params)
    packed = pack_params(params)                                          # model-load time

    pred_wp = imitation_head_forward(z_feat, goal_point, goal_point_speed, packed)
    pred_wp = jax.block_until_ready(pred_wp)

    ref = reference_forward(z_feat, goal_point, goal_point_speed, params)
    np.testing.assert_allclose(np.asarray(pred_wp), np.asarray(ref), rtol=1e-4, atol=1e-4)
    assert pred_wp.shape == (B, PRED_LEN, 3)
    print("KERNEL_OK")
</pallas_src>

<mosaic_0001>
module attributes {stable_mosaic.version = 11 : i64} {
  func.func @imitation_kernel(%arg0: memref<2x64x64xf32, #tpu.memory_space<vmem>>, %arg1: memref<2x3xf32, #tpu.memory_space<vmem>>, %arg2: memref<544x256xf32, #tpu.memory_space<vmem>>, %arg3: memref<184x192xf32, #tpu.memory_space<vmem>>, %arg4: memref<2x12xf32, #tpu.memory_space<vmem>>) attributes {dimension_semantics = [], scalar_prefetch = 0 : i64, scratch_operands = 0 : i64, tpu.core_type = #tpu.core_type<tc>} {
    %c0 = arith.constant 0 : index
    %c0_0 = arith.constant 0 : index
    %c0_1 = arith.constant 0 : index
    %0 = vector.load %arg0[%c0, %c0_0, %c0_1] : memref<2x64x64xf32, #tpu.memory_space<vmem>>, vector<2x64x64xf32>
    %cst = arith.constant dense<0.000000e+00> : vector<2x64xf32>
    %1 = vector.multi_reduction <add>, %0, %cst [2] : vector<2x64x64xf32> to vector<2x64xf32>
    %cst_2 = arith.constant 6.400000e+01 : f32
    %2 = vector.broadcast %cst_2 : f32 to vector<2x64xf32>
    %3 = arith.divf %1, %2 : vector<2x64xf32>
    %c0_3 = arith.constant 0 : index
    %c0_4 = arith.constant 0 : index
    %4 = vector.load %arg2[%c0_3, %c0_4] : memref<544x256xf32, #tpu.memory_space<vmem>>, vector<64x64xf32>
    %c64 = arith.constant 64 : index
    %c0_5 = arith.constant 0 : index
    %5 = vector.load %arg2[%c64, %c0_5] : memref<544x256xf32, #tpu.memory_space<vmem>>, vector<64x256xf32>
    %c128 = arith.constant 128 : index
    %c0_6 = arith.constant 0 : index
    %6 = vector.load %arg2[%c128, %c0_6] : memref<544x256xf32, #tpu.memory_space<vmem>>, vector<256x128xf32>
    %c384 = arith.constant 384 : index
    %c0_7 = arith.constant 0 : index
    %7 = vector.load %arg2[%c384, %c0_7] : memref<544x256xf32, #tpu.memory_space<vmem>>, vector<128x64xf32>
    %c512 = arith.constant 512 : index
    %c0_8 = arith.constant 0 : index
    %8 = vector.load %arg2[%c512, %c0_8] : memref<544x256xf32, #tpu.memory_space<vmem>>, vector<1x64xf32>
    %c520 = arith.constant 520 : index
    %c0_9 = arith.constant 0 : index
    %9 = vector.load %arg2[%c520, %c0_9] : memref<544x256xf32, #tpu.memory_space<vmem>>, vector<1x256xf32>
    %c528 = arith.constant 528 : index
    %c0_10 = arith.constant 0 : index
    %10 = vector.load %arg2[%c528, %c0_10] : memref<544x256xf32, #tpu.memory_space<vmem>>, vector<1x128xf32>
    %c536 = arith.constant 536 : index
    %c0_11 = arith.constant 0 : index
    %11 = vector.load %arg2[%c536, %c0_11] : memref<544x256xf32, #tpu.memory_space<vmem>>, vector<1x64xf32>
    %cst_12 = arith.constant dense<0.000000e+00> : vector<2x64xf32>
    %12 = tpu.matmul %3, %4, %cst_12 {dimension_numbers = #tpu.dot_dimension_numbers<[1], [0], [0], [1], [0, 0, 1, 1], [], []>} : vector<2x64xf32>, vector<64x64xf32>, vector<2x64xf32> -> vector<2x64xf32>
    %13 = vector.broadcast %8 : vector<1x64xf32> to vector<2x64xf32>
    %14 = arith.addf %12, %13 : vector<2x64xf32>
    %cst_13 = arith.constant 0.000000e+00 : f32
    %15 = vector.broadcast %cst_13 : f32 to vector<2x64xf32>
    %16 = arith.maximumf %14, %15 : vector<2x64xf32>
    %cst_14 = arith.constant dense<0.000000e+00> : vector<2x256xf32>
    %17 = tpu.matmul %16, %5, %cst_14 {dimension_numbers = #tpu.dot_dimension_numbers<[1], [0], [0], [1], [0, 0, 1, 1], [], []>} : vector<2x64xf32>, vector<64x256xf32>, vector<2x256xf32> -> vector<2x256xf32>
    %18 = vector.broadcast %9 : vector<1x256xf32> to vector<2x256xf32>
    %19 = arith.addf %17, %18 : vector<2x256xf32>
    %cst_15 = arith.constant 0.000000e+00 : f32
    %20 = vector.broadcast %cst_15 : f32 to vector<2x256xf32>
    %21 = arith.maximumf %19, %20 : vector<2x256xf32>
    %cst_16 = arith.constant dense<0.000000e+00> : vector<2x128xf32>
    %22 = tpu.matmul %21, %6, %cst_16 {dimension_numbers = #tpu.dot_dimension_numbers<[1], [0], [0], [1], [0, 0, 1, 1], [], []>} : vector<2x256xf32>, vector<256x128xf32>, vector<2x128xf32> -> vector<2x128xf32>
    %23 = vector.broadcast %10 : vector<1x128xf32> to vector<2x128xf32>
    %24 = arith.addf %22, %23 : vector<2x128xf32>
    %cst_17 = arith.constant 0.000000e+00 : f32
    %25 = vector.broadcast %cst_17 : f32 to vector<2x128xf32>
    %26 = arith.maximumf %24, %25 : vector<2x128xf32>
    %cst_18 = arith.constant dense<0.000000e+00> : vector<2x64xf32>
    %27 = tpu.matmul %26, %7, %cst_18 {dimension_numbers = #tpu.dot_dimension_numbers<[1], [0], [0], [1], [0, 0, 1, 1], [], []>} : vector<2x128xf32>, vector<128x64xf32>, vector<2x64xf32> -> vector<2x64xf32>
    %28 = vector.broadcast %11 : vector<1x64xf32> to vector<2x64xf32>
    %29 = arith.addf %27, %28 : vector<2x64xf32>
    %cst_19 = arith.constant 0.000000e+00 : f32
    %30 = vector.broadcast %cst_19 : f32 to vector<2x64xf32>
    %31 = arith.maximumf %29, %30 : vector<2x64xf32>
    %c0_20 = arith.constant 0 : index
    %c0_21 = arith.constant 0 : index
    %32 = vector.load %arg1[%c0_20, %c0_21] : memref<2x3xf32, #tpu.memory_space<vmem>>, vector<2x3xf32>
    %c0_22 = arith.constant 0 : index
    %c0_23 = arith.constant 0 : index
    %33 = vector.load %arg3[%c0_22, %c0_23] : memref<184x192xf32, #tpu.memory_space<vmem>>, vector<64x192xf32>
    %c64_24 = arith.constant 64 : index
    %c0_25 = arith.constant 0 : index
    %34 = vector.load %arg3[%c64_24, %c0_25] : memref<184x192xf32, #tpu.memory_space<vmem>>, vector<3x192xf32>
    %c72 = arith.constant 72 : index
    %c0_26 = arith.constant 0 : index
    %35 = vector.load %arg3[%c72, %c0_26] : memref<184x192xf32, #tpu.memory_space<vmem>>, vector<3x192xf32>
    %c80 = arith.constant 80 : index
    %c0_27 = arith.constant 0 : index
    %36 = vector.load %arg3[%c80, %c0_27] : memref<184x192xf32, #tpu.memory_space<vmem>>, vector<1x192xf32>
    %c88 = arith.constant 88 : index
    %c128_28 = arith.constant 128 : index
    %37 = vector.load %arg3[%c88, %c128_28] : memref<184x192xf32, #tpu.memory_space<vmem>>, vector<1x64xf32>
    %c96 = arith.constant 96 : index
    %c0_29 = arith.constant 0 : index
    %38 = vector.load %arg3[%c96, %c0_29] : memref<184x192xf32, #tpu.memory_space<vmem>>, vector<64x4xf32>
    %c160 = arith.constant 160 : index
    %c0_30 = arith.constant 0 : index
    %39 = vector.load %arg3[%c160, %c0_30] : memref<184x192xf32, #tpu.memory_space<vmem>>, vector<1x4xf32>
    %c168 = arith.constant 168 : index
    %c0_31 = arith.constant 0 : index
    %40 = vector.load %arg3[%c168, %c0_31] : memref<184x192xf32, #tpu.memory_space<vmem>>, vector<4x3xf32>
    %c176 = arith.constant 176 : index
    %c0_32 = arith.constant 0 : index
    %41 = vector.load %arg3[%c176, %c0_32] : memref<184x192xf32, #tpu.memory_space<vmem>>, vector<1x3xf32>
    %cst_33 = arith.constant dense<0.000000e+00> : vector<2x192xf32>
    %42 = tpu.matmul %32, %35, %cst_33 {dimension_numbers = #tpu.dot_dimension_numbers<[1], [0], [0], [1], [0, 0, 1, 1], [], []>} : vector<2x3xf32>, vector<3x192xf32>, vector<2x192xf32> -> vector<2x192xf32>
    %43 = vector.broadcast %36 : vector<1x192xf32> to vector<2x192xf32>
    %44 = arith.addf %42, %43 : vector<2x192xf32>
    %cst_34 = arith.constant 0.000000e+00 : f32
    %45 = vector.broadcast %cst_34 : f32 to vector<2x3xf32>
    %cst_35 = arith.constant dense<0.000000e+00> : vector<2x192xf32>
    %46 = tpu.matmul %45, %34, %cst_35 {dimension_numbers = #tpu.dot_dimension_numbers<[1], [0], [0], [1], [0, 0, 1, 1], [], []>} : vector<2x3xf32>, vector<3x192xf32>, vector<2x192xf32> -> vector<2x192xf32>
    %47 = arith.addf %46, %44 : vector<2x192xf32>
    %cst_36 = arith.constant dense<0.000000e+00> : vector<2x192xf32>
    %48 = tpu.matmul %31, %33, %cst_36 {dimension_numbers = #tpu.dot_dimension_numbers<[1], [0], [0], [1], [0, 0, 1, 1], [], []>} : vector<2x64xf32>, vector<64x192xf32>, vector<2x192xf32> -> vector<2x192xf32>
    %49 = vector.extract_strided_slice %47 {offsets = [0, 0], sizes = [2, 128], strides = [1, 1]} : vector<2x192xf32> to vector<2x128xf32>
    %50 = vector.extract_strided_slice %48 {offsets = [0, 0], sizes = [2, 128], strides = [1, 1]} : vector<2x192xf32> to vector<2x128xf32>
    %51 = arith.addf %49, %50 : vector<2x128xf32>
    %52 = arith.negf %51 : vector<2x128xf32>
    %53 = math.exp %52 : vector<2x128xf32>
    %cst_37 = arith.constant 1.000000e+00 : f32
    %54 = vector.broadcast %cst_37 : f32 to vector<2x128xf32>
    %55 = arith.addf %54, %53 : vector<2x128xf32>
    %56 = arith.divf %54, %55 : vector<2x128xf32>
    %57 = vector.extract_strided_slice %56 {offsets = [0, 0], sizes = [2, 64], strides = [1, 1]} : vector<2x128xf32> to vector<2x64xf32>
    %58 = vector.extract_strided_slice %56 {offsets = [0, 64], sizes = [2, 64], strides = [1, 1]} : vector<2x128xf32> to vector<2x64xf32>
    %59 = vector.extract_strided_slice %47 {offsets = [0, 128], sizes = [2, 64], strides = [1, 1]} : vector<2x192xf32> to vector<2x64xf32>
    %60 = vector.extract_strided_slice %48 {offsets = [0, 128], sizes = [2, 64], strides = [1, 1]} : vector<2x192xf32> to vector<2x64xf32>
    %61 = vector.broadcast %37 : vector<1x64xf32> to vector<2x64xf32>
    %62 = arith.addf %60, %61 : vector<2x64xf32>
    %63 = arith.mulf %57, %62 : vector<2x64xf32>
    %64 = arith.addf %59, %63 : vector<2x64xf32>
    %65 = math.tanh %64 : vector<2x64xf32>
    %cst_38 = arith.constant 1.000000e+00 : f32
    %66 = vector.broadcast %cst_38 : f32 to vector<2x64xf32>
    %67 = arith.subf %66, %58 : vector<2x64xf32>
    %68 = arith.mulf %67, %65 : vector<2x64xf32>
    %69 = arith.mulf %58, %31 : vector<2x64xf32>
    %70 = arith.addf %68, %69 : vector<2x64xf32>
    %cst_39 = arith.constant dense<0.000000e+00> : vector<2x4xf32>
    %71 = tpu.matmul %70, %38, %cst_39 {dimension_numbers = #tpu.dot_dimension_numbers<[1], [0], [0], [1], [0, 0, 1, 1], [], []>} : vector<2x64xf32>, vector<64x4xf32>, vector<2x4xf32> -> vector<2x4xf32>
    %72 = vector.broadcast %39 : vector<1x4xf32> to vector<2x4xf32>
    %73 = arith.addf %71, %72 : vector<2x4xf32>
    %cst_40 = arith.constant 0.000000e+00 : f32
    %74 = vector.broadcast %cst_40 : f32 to vector<2x4xf32>
    %75 = arith.maximumf %73, %74 : vector<2x4xf32>
    %cst_41 = arith.constant dense<0.000000e+00> : vector<2x3xf32>
    %76 = tpu.matmul %75, %40, %cst_41 {dimension_numbers = #tpu.dot_dimension_numbers<[1], [0], [0], [1], [0, 0, 1, 1], [], []>} : vector<2x4xf32>, vector<4x3xf32>, vector<2x3xf32> -> vector<2x3xf32>
    %77 = vector.broadcast %41 : vector<1x3xf32> to vector<2x3xf32>
    %78 = arith.addf %76, %77 : vector<2x3xf32>
    %79 = arith.addf %78, %45 : vector<2x3xf32>
    %cst_42 = arith.constant dense<0.000000e+00> : vector<2x192xf32>
    %80 = tpu.matmul %79, %34, %cst_42 {dimension_numbers = #tpu.dot_dimension_numbers<[1], [0], [0], [1], [0, 0, 1, 1], [], []>} : vector<2x3xf32>, vector<3x192xf32>, vector<2x192xf32> -> vector<2x192xf32>
    %81 = arith.addf %80, %44 : vector<2x192xf32>
    %cst_43 = arith.constant dense<0.000000e+00> : vector<2x192xf32>
    %82 = tpu.matmul %70, %33, %cst_43 {dimension_numbers = #tpu.dot_dimension_numbers<[1], [0], [0], [1], [0, 0, 1, 1], [], []>} : vector<2x64xf32>, vector<64x192xf32>, vector<2x192xf32> -> vector<2x192xf32>
    %83 = vector.extract_strided_slice %81 {offsets = [0, 0], sizes = [2, 128], strides = [1, 1]} : vector<2x192xf32> to vector<2x128xf32>
    %84 = vector.extract_strided_slice %82 {offsets = [0, 0], sizes = [2, 128], strides = [1, 1]} : vector<2x192xf32> to vector<2x128xf32>
    %85 = arith.addf %83, %84 : vector<2x128xf32>
    %86 = arith.negf %85 : vector<2x128xf32>
    %87 = math.exp %86 : vector<2x128xf32>
    %cst_44 = arith.constant 1.000000e+00 : f32
    %88 = vector.broadcast %cst_44 : f32 to vector<2x128xf32>
    %89 = arith.addf %88, %87 : vector<2x128xf32>
    %90 = arith.divf %88, %89 : vector<2x128xf32>
    %91 = vector.extract_strided_slice %90 {offsets = [0, 0], sizes = [2, 64], strides = [1, 1]} : vector<2x128xf32> to vector<2x64xf32>
    %92 = vector.extract_strided_slice %90 {offsets = [0, 64], sizes = [2, 64], strides = [1, 1]} : vector<2x128xf32> to vector<2x64xf32>
    %93 = vector.extract_strided_slice %81 {offsets = [0, 128], sizes = [2, 64], strides = [1, 1]} : vector<2x192xf32> to vector<2x64xf32>
    %94 = vector.extract_strided_slice %82 {offsets = [0, 128], sizes = [2, 64], strides = [1, 1]} : vector<2x192xf32> to vector<2x64xf32>
    %95 = vector.broadcast %37 : vector<1x64xf32> to vector<2x64xf32>
    %96 = arith.addf %94, %95 : vector<2x64xf32>
    %97 = arith.mulf %91, %96 : vector<2x64xf32>
    %98 = arith.addf %93, %97 : vector<2x64xf32>
    %99 = math.tanh %98 : vector<2x64xf32>
    %cst_45 = arith.constant 1.000000e+00 : f32
    %100 = vector.broadcast %cst_45 : f32 to vector<2x64xf32>
    %101 = arith.subf %100, %92 : vector<2x64xf32>
    %102 = arith.mulf %101, %99 : vector<2x64xf32>
    %103 = arith.mulf %92, %70 : vector<2x64xf32>
    %104 = arith.addf %102, %103 : vector<2x64xf32>
    %cst_46 = arith.constant dense<0.000000e+00> : vector<2x4xf32>
    %105 = tpu.matmul %104, %38, %cst_46 {dimension_numbers = #tpu.dot_dimension_numbers<[1], [0], [0], [1], [0, 0, 1, 1], [], []>} : vector<2x64xf32>, vector<64x4xf32>, vector<2x4xf32> -> vector<2x4xf32>
    %106 = vector.broadcast %39 : vector<1x4xf32> to vector<2x4xf32>
    %107 = arith.addf %105, %106 : vector<2x4xf32>
    %cst_47 = arith.constant 0.000000e+00 : f32
    %108 = vector.broadcast %cst_47 : f32 to vector<2x4xf32>
    %109 = arith.maximumf %107, %108 : vector<2x4xf32>
    %cst_48 = arith.constant dense<0.000000e+00> : vector<2x3xf32>
    %110 = tpu.matmul %109, %40, %cst_48 {dimension_numbers = #tpu.dot_dimension_numbers<[1], [0], [0], [1], [0, 0, 1, 1], [], []>} : vector<2x4xf32>, vector<4x3xf32>, vector<2x3xf32> -> vector<2x3xf32>
    %111 = vector.broadcast %41 : vector<1x3xf32> to vector<2x3xf32>
    %112 = arith.addf %110, %111 : vector<2x3xf32>
    %113 = arith.addf %112, %79 : vector<2x3xf32>
    %cst_49 = arith.constant dense<0.000000e+00> : vector<2x192xf32>
    %114 = tpu.matmul %113, %34, %cst_49 {dimension_numbers = #tpu.dot_dimension_numbers<[1], [0], [0], [1], [0, 0, 1, 1], [], []>} : vector<2x3xf32>, vector<3x192xf32>, vector<2x192xf32> -> vector<2x192xf32>
    %115 = arith.addf %114, %44 : vector<2x192xf32>
    %cst_50 = arith.constant dense<0.000000e+00> : vector<2x192xf32>
    %116 = tpu.matmul %104, %33, %cst_50 {dimension_numbers = #tpu.dot_dimension_numbers<[1], [0], [0], [1], [0, 0, 1, 1], [], []>} : vector<2x64xf32>, vector<64x192xf32>, vector<2x192xf32> -> vector<2x192xf32>
    %117 = vector.extract_strided_slice %115 {offsets = [0, 0], sizes = [2, 128], strides = [1, 1]} : vector<2x192xf32> to vector<2x128xf32>
    %118 = vector.extract_strided_slice %116 {offsets = [0, 0], sizes = [2, 128], strides = [1, 1]} : vector<2x192xf32> to vector<2x128xf32>
    %119 = arith.addf %117, %118 : vector<2x128xf32>
    %120 = arith.negf %119 : vector<2x128xf32>
    %121 = math.exp %120 : vector<2x128xf32>
    %cst_51 = arith.constant 1.000000e+00 : f32
    %122 = vector.broadcast %cst_51 : f32 to vector<2x128xf32>
    %123 = arith.addf %122, %121 : vector<2x128xf32>
    %124 = arith.divf %122, %123 : vector<2x128xf32>
    %125 = vector.extract_strided_slice %124 {offsets = [0, 0], sizes = [2, 64], strides = [1, 1]} : vector<2x128xf32> to vector<2x64xf32>
    %126 = vector.extract_strided_slice %124 {offsets = [0, 64], sizes = [2, 64], strides = [1, 1]} : vector<2x128xf32> to vector<2x64xf32>
    %127 = vector.extract_strided_slice %115 {offsets = [0, 128], sizes = [2, 64], strides = [1, 1]} : vector<2x192xf32> to vector<2x64xf32>
    %128 = vector.extract_strided_slice %116 {offsets = [0, 128], sizes = [2, 64], strides = [1, 1]} : vector<2x192xf32> to vector<2x64xf32>
    %129 = vector.broadcast %37 : vector<1x64xf32> to vector<2x64xf32>
    %130 = arith.addf %128, %129 : vector<2x64xf32>
    %131 = arith.mulf %125, %130 : vector<2x64xf32>
    %132 = arith.addf %127, %131 : vector<2x64xf32>
    %133 = math.tanh %132 : vector<2x64xf32>
    %cst_52 = arith.constant 1.000000e+00 : f32
    %134 = vector.broadcast %cst_52 : f32 to vector<2x64xf32>
    %135 = arith.subf %134, %126 : vector<2x64xf32>
    %136 = arith.mulf %135, %133 : vector<2x64xf32>
    %137 = arith.mulf %126, %104 : vector<2x64xf32>
    %138 = arith.addf %136, %137 : vector<2x64xf32>
    %cst_53 = arith.constant dense<0.000000e+00> : vector<2x4xf32>
    %139 = tpu.matmul %138, %38, %cst_53 {dimension_numbers = #tpu.dot_dimension_numbers<[1], [0], [0], [1], [0, 0, 1, 1], [], []>} : vector<2x64xf32>, vector<64x4xf32>, vector<2x4xf32> -> vector<2x4xf32>
    %140 = vector.broadcast %39 : vector<1x4xf32> to vector<2x4xf32>
    %141 = arith.addf %139, %140 : vector<2x4xf32>
    %cst_54 = arith.constant 0.000000e+00 : f32
    %142 = vector.broadcast %cst_54 : f32 to vector<2x4xf32>
    %143 = arith.maximumf %141, %142 : vector<2x4xf32>
    %cst_55 = arith.constant dense<0.000000e+00> : vector<2x3xf32>
    %144 = tpu.matmul %143, %40, %cst_55 {dimension_numbers = #tpu.dot_dimension_numbers<[1], [0], [0], [1], [0, 0, 1, 1], [], []>} : vector<2x4xf32>, vector<4x3xf32>, vector<2x3xf32> -> vector<2x3xf32>
    %145 = vector.broadcast %41 : vector<1x3xf32> to vector<2x3xf32>
    %146 = arith.addf %144, %145 : vector<2x3xf32>
    %147 = arith.addf %146, %113 : vector<2x3xf32>
    %cst_56 = arith.constant dense<0.000000e+00> : vector<2x192xf32>
    %148 = tpu.matmul %147, %34, %cst_56 {dimension_numbers = #tpu.dot_dimension_numbers<[1], [0], [0], [1], [0, 0, 1, 1], [], []>} : vector<2x3xf32>, vector<3x192xf32>, vector<2x192xf32> -> vector<2x192xf32>
    %149 = arith.addf %148, %44 : vector<2x192xf32>
    %cst_57 = arith.constant dense<0.000000e+00> : vector<2x192xf32>
    %150 = tpu.matmul %138, %33, %cst_57 {dimension_numbers = #tpu.dot_dimension_numbers<[1], [0], [0], [1], [0, 0, 1, 1], [], []>} : vector<2x64xf32>, vector<64x192xf32>, vector<2x192xf32> -> vector<2x192xf32>
    %151 = vector.extract_strided_slice %149 {offsets = [0, 0], sizes = [2, 128], strides = [1, 1]} : vector<2x192xf32> to vector<2x128xf32>
    %152 = vector.extract_strided_slice %150 {offsets = [0, 0], sizes = [2, 128], strides = [1, 1]} : vector<2x192xf32> to vector<2x128xf32>
    %153 = arith.addf %151, %152 : vector<2x128xf32>
    %154 = arith.negf %153 : vector<2x128xf32>
    %155 = math.exp %154 : vector<2x128xf32>
    %cst_58 = arith.constant 1.000000e+00 : f32
    %156 = vector.broadcast %cst_58 : f32 to vector<2x128xf32>
    %157 = arith.addf %156, %155 : vector<2x128xf32>
    %158 = arith.divf %156, %157 : vector<2x128xf32>
    %159 = vector.extract_strided_slice %158 {offsets = [0, 0], sizes = [2, 64], strides = [1, 1]} : vector<2x128xf32> to vector<2x64xf32>
    %160 = vector.extract_strided_slice %158 {offsets = [0, 64], sizes = [2, 64], strides = [1, 1]} : vector<2x128xf32> to vector<2x64xf32>
    %161 = vector.extract_strided_slice %149 {offsets = [0, 128], sizes = [2, 64], strides = [1, 1]} : vector<2x192xf32> to vector<2x64xf32>
    %162 = vector.extract_strided_slice %150 {offsets = [0, 128], sizes = [2, 64], strides = [1, 1]} : vector<2x192xf32> to vector<2x64xf32>
    %163 = vector.broadcast %37 : vector<1x64xf32> to vector<2x64xf32>
    %164 = arith.addf %162, %163 : vector<2x64xf32>
    %165 = arith.mulf %159, %164 : vector<2x64xf32>
    %166 = arith.addf %161, %165 : vector<2x64xf32>
    %167 = math.tanh %166 : vector<2x64xf32>
    %cst_59 = arith.constant 1.000000e+00 : f32
    %168 = vector.broadcast %cst_59 : f32 to vector<2x64xf32>
    %169 = arith.subf %168, %160 : vector<2x64xf32>
    %170 = arith.mulf %169, %167 : vector<2x64xf32>
    %171 = arith.mulf %160, %138 : vector<2x64xf32>
    %172 = arith.addf %170, %171 : vector<2x64xf32>
    %cst_60 = arith.constant dense<0.000000e+00> : vector<2x4xf32>
    %173 = tpu.matmul %172, %38, %cst_60 {dimension_numbers = #tpu.dot_dimension_numbers<[1], [0], [0], [1], [0, 0, 1, 1], [], []>} : vector<2x64xf32>, vector<64x4xf32>, vector<2x4xf32> -> vector<2x4xf32>
    %174 = vector.broadcast %39 : vector<1x4xf32> to vector<2x4xf32>
    %175 = arith.addf %173, %174 : vector<2x4xf32>
    %cst_61 = arith.constant 0.000000e+00 : f32
    %176 = vector.broadcast %cst_61 : f32 to vector<2x4xf32>
    %177 = arith.maximumf %175, %176 : vector<2x4xf32>
    %cst_62 = arith.constant dense<0.000000e+00> : vector<2x3xf32>
    %178 = tpu.matmul %177, %40, %cst_62 {dimension_numbers = #tpu.dot_dimension_numbers<[1], [0], [0], [1], [0, 0, 1, 1], [], []>} : vector<2x4xf32>, vector<4x3xf32>, vector<2x3xf32> -> vector<2x3xf32>
    %179 = vector.broadcast %41 : vector<1x3xf32> to vector<2x3xf32>
    %180 = arith.addf %178, %179 : vector<2x3xf32>
    %181 = arith.addf %180, %147 : vector<2x3xf32>
    %182 = tpu.concatenate %79, %113, %147, %181 in 1 : vector<2x3xf32>, vector<2x3xf32>, vector<2x3xf32>, vector<2x3xf32> -> vector<2x12xf32>
    %c0_63 = arith.constant 0 : index
    %c0_64 = arith.constant 0 : index
    %183 = vector.load %arg4[%c0_63, %c0_64] : memref<2x12xf32, #tpu.memory_space<vmem>>, vector<2x12xf32>
    tpu.vector_store %arg4[%c0_63, %c0_64], %182 {strides = array<i32>} : memref<2x12xf32, #tpu.memory_space<vmem>>, vector<2x12xf32>,
    return
  }
}

</mosaic_0001>

<bundles_post_ra>
// kernel: tpu_custom_call.1
= control target key start
LH: loop header
LB: loop body
LE: loop exit
PB: predicated region body
PF: predicated region fallthrough
CT: control target
= control target key end

     0   :  { %9 = vsyncpa [#allocation3], 0  ;;  %s3070_s0 = inlined_call_operand.hbm [shape: f32[2,64,64], index: 0, kind: input, shape index: {}]   ;;  %s3071_s1 = inlined_call_operand.vmem [shape: f32[2,3], index: 1, kind: input, shape index: {}]   ;;  %s3072_s2 = inlined_call_operand.hbm [shape: f32[544,256], index: 2, kind: input, shape index: {}]   ;;  %s3073_s3 = inlined_call_operand.hbm [shape: f32[184,192], index: 3, kind: input, shape index: {}]   ;;  %s3074_s4 = inlined_call_operand.hbm [shape: f32[2,12], index: 4, kind: output, shape index: {}]  }
   0x1   :  { %10 = vsyncpa [#allocation6], 0 }
   0x2   :  { %11 = vsyncpa [#allocation4], 0  ;;  %s2686_s15 = smov [#allocation5]   ;;  %s2592_s19 = scalar_lea.hbm %s3072_s2, 17408 }
   0x3   :  { %s31_s16 = sshll.u32 %s2686_s15, 4  ;;  %p2593_p0 = scmp.ne.s32.totalorder %s3072_s2, %s2592_s19  ;;  %s32_s16 = int_to_ptr.vmem [resolvable:$true] %s31_s16 }
   0x4   :  { %p2596_p1 = scmp.lt.u32.totalorder %s2592_s19, %s3072_s2 }
   0x6   :  { %p2598_p2 = pnand %p2596_p1, %p2593_p0 }
   0x8   :  { %2601 = shalt.err (!%p2598_p2)
}
   0x9   :  { %s2602_s24 = scalar_lea.vmem %s32_s16, 17408  ;;  %p2607_p4 = scmp.lt.s32.totalorder %s32_s16, %s32_s16 }
   0xa   :  { %p2603_p3 = scmp.ne.s32.totalorder %s32_s16, %s2602_s24  ;;  %p2608_p5 = scmp.lt.s32.totalorder %s2602_s24, %s2602_s24 }
   0xc   :  { %p2609_p6 = por %p2608_p5, %p2607_p4 }
   0xe   :  { %p2610_p7 = pnand %p2609_p6, %p2603_p3 }
  0x10   :  { %2613 = shalt.err (!%p2610_p7)
}
  0x11   :  { %s2687_s25 = smov 256   ;;  %s2688_s26 = smov 16  }
  0x12   :  { %37 = dma.hbm_to_vmem [thread:$0]  %s3072_s2, 17408, %s32_s16, [#allocation6], %s2687_s25, %s2687_s25, %s2688_s26  }
  0x13   :  { %s2689_s29 = smov [#allocation2]   ;;  %s2614_s7 = scalar_lea.hbm %s3070_s0, 2048 }
  0x14   :  { %s17_s30 = sshll.u32 %s2689_s29, 4  ;;  %p2615_p8 = scmp.ne.s32.totalorder %s3070_s0, %s2614_s7  ;;  %s18_s30 = int_to_ptr.vmem [resolvable:$true] %s17_s30 }
  0x15   :  { %p2618_p9 = scmp.lt.u32.totalorder %s2614_s7, %s3070_s0 }
  0x17   :  { %p2620_p10 = pnand %p2618_p9, %p2615_p8 }
  0x19   :  { %2623 = shalt.err (!%p2620_p10)
}
  0x1a   :  { %s2624_s12 = scalar_lea.vmem %s18_s30, 2048  ;;  %p2629_p12 = scmp.lt.s32.totalorder %s18_s30, %s18_s30 }
  0x1b   :  { %p2625_p11 = scmp.ne.s32.totalorder %s18_s30, %s2624_s12  ;;  %p2630_p13 = scmp.lt.s32.totalorder %s2624_s12, %s2624_s12 }
  0x1d   :  { %p2631_p0 = por %p2630_p13, %p2629_p12 }
  0x1f   :  { %p2632_p1 = pnand %p2631_p0, %p2625_p11 }
  0x21   :  { %2635 = shalt.err (!%p2632_p1)
}
  0x22   :  { %s2690_s2 = smov 128   ;;  %s2691_s13 = smov 8  }
  0x23   :  { %23 = dma.hbm_to_vmem [thread:$0]  %s3070_s0, 2048, %s18_s30, [#allocation3], %s2690_s2, %s2690_s2, %s2691_s13  }
  0x24   :  { %s2692_s16 = smov [#allocation7]   ;;  %s2636_s20 = scalar_lea.hbm %s3073_s3, 5888 }
  0x25   :  { %s43_s17 = sshll.u32 %s2692_s16, 4  ;;  %p2637_p2 = scmp.ne.s32.totalorder %s3073_s3, %s2636_s20  ;;  %s44_s17 = int_to_ptr.vmem [resolvable:$true] %s43_s17 }
  0x26   :  { %p2640_p3 = scmp.lt.u32.totalorder %s2636_s20, %s3073_s3 }
  0x28   :  { %p2642_p4 = pnand %p2640_p3, %p2637_p2 }
  0x2a   :  { %2645 = shalt.err (!%p2642_p4)
}
  0x2b   :  { %s2646_s27 = scalar_lea.vmem %s44_s17, 5888  ;;  %p2651_p6 = scmp.lt.s32.totalorder %s44_s17, %s44_s17 }
  0x2c   :  { %p2647_p5 = scmp.ne.s32.totalorder %s44_s17, %s2646_s27  ;;  %p2652_p7 = scmp.lt.s32.totalorder %s2646_s27, %s2646_s27 }
  0x2e   :  { %p2653_p8 = por %p2652_p7, %p2651_p6 }
  0x30   :  { %p2654_p9 = pnand %p2653_p8, %p2647_p5 }
  0x32   :  { %2657 = shalt.err (!%p2654_p9)
}
  0x33   :  { %49 = dma.hbm_to_vmem [thread:$0]  %s3073_s3, 5888, %s44_s17, [#allocation6], %s2687_s25, %s2687_s25, %s2688_s26  }
  0x34   :  { %2680 = dma.done.wait [#allocation3], 2048  }
  0x35   :  { %2681 = vsyncadd [#allocation3], 4294965248 }
  0x36   :  { %2682 = dma.done.wait [#allocation6], 23296  }
  0x37   :  { %2683 = vsyncadd [#allocation6], 4294944000  ;;  %vm75_vm0 = vcmask 523264   ;;  %v67_v0 = vld [vmem:[#allocation2 + $0x40] sm:$0xff]  ;;  %v68_v2 = vld [vmem:[#allocation2 + $0x48] sm:$0xff]  ;;  %v2693_v35 = vmov 0.0|0.0  }
  0x38   :  { %v59_v1 = vld [vmem:[#allocation2] sm:$0xff]  ;;  %v100_v3 = vsel %vm75_vm0, %v67_v0, 0.0  ;;  %v60_v5 = vld [vmem:[#allocation2 + $0x8] sm:$0xff]  ;;  %v103_v6 = vsel %vm75_vm0, %v68_v2, 0.0  ;;  %v69_v8 = vld [vmem:[#allocation2 + $0x50] sm:$0xff]  ;;  %2357 = vmatprep.subr.bf16.mxu0 %v2693_v35  ;;  %vm2694_vm1 = vmmov 0  }
  0x39   :  { %v76_v4 = vsel %vm75_vm0, %v59_v1, 0.0  ;;  %101 = vadd.xlane.f32.xlu1 %v100_v3  ;;  %v79_v7 = vsel %vm75_vm0, %v60_v5, 0.0  ;;  %v61_v9 = vld [vmem:[#allocation2 + $0x10] sm:$0xff]  ;;  %v106_v10 = vsel %vm75_vm0, %v69_v8, 0.0  ;;  %v70_v12 = vld [vmem:[#allocation2 + $0x58] sm:$0xff]  ;;  %v71_v16 = vld [vmem:[#allocation2 + $0x60] sm:$0xff] }
  0x3a   :  { %77 = vadd.xlane.f32.xlu0 %v76_v4  ;;  %v82_v11 = vsel %vm75_vm0, %v61_v9, 0.0  ;;  %v62_v13 = vld [vmem:[#allocation2 + $0x18] sm:$0xff]  ;;  %v109_v14 = vsel %vm75_vm0, %v70_v12, 0.0  ;;  %v63_v17 = vld [vmem:[#allocation2 + $0x20] sm:$0xff]  ;;  %v112_v18 = vsel %vm75_vm0, %v71_v16, 0.0  ;;  %v72_v20 = vld [vmem:[#allocation2 + $0x68] sm:$0xff]  ;;  %v234_v4 = vlaneseq }
  0x3b   :  { %v85_v15 = vsel %vm75_vm0, %v62_v13, 0.0  ;;  %v88_v19 = vsel %vm75_vm0, %v63_v17, 0.0  ;;  %v64_v21 = vld [vmem:[#allocation2 + $0x28] sm:$0xff]  ;;  %v115_v22 = vsel %vm75_vm0, %v72_v20, 0.0  ;;  %v73_v24 = vld [vmem:[#allocation2 + $0x70] sm:$0xff]  ;;  %v74_v28 = vld [vmem:[#allocation2 + $0x78] sm:$0xff] }
  0x3c   :  { %v91_v23 = vsel %vm75_vm0, %v64_v21, 0.0  ;;  %v65_v25 = vld [vmem:[#allocation2 + $0x30] sm:$0xff]  ;;  %v118_v26 = vsel %vm75_vm0, %v73_v24, 0.0  ;;  %v66_v29 = vld [vmem:[#allocation2 + $0x38] sm:$0xff]  ;;  %v121_v30 = vsel %vm75_vm0, %v74_v28, 0.0  ;;  %v141_v32 = vld [vmem:[#allocation5] sm:$0xff] }
  0x3d   :  { %104 = vadd.xlane.f32.xlu1 %v103_v6  ;;  %v94_v27 = vsel %vm75_vm0, %v65_v25, 0.0  ;;  %v97_v31 = vsel %vm75_vm0, %v66_v29, 0.0  ;;  %v142_v33 = vld [vmem:[#allocation5 + $0x10] sm:$0xff]  ;;  %v143_v36 = vld [vmem:[#allocation5 + $0x20] sm:$0xff]  ;;  %v2695_v45 = vmov 0.0   ;;  %v150_v46 = vld [vmem:[#allocation5 + $0x88] sm:$0xff] }
  0x3e   :  { %80 = vadd.xlane.f32.xlu0 %v79_v7  ;;  %v2358_v34 = vpack.c.bf16 %v142_v33, %v141_v32  ;;  %v144_v37 = vld [vmem:[#allocation5 + $0x30] sm:$0xff]  ;;  %v145_v39 = vld [vmem:[#allocation5 + $0x40] sm:$0xff]  ;;  %2223 = vmatprep.mubr.msk.f32.mxu0 %vm2694_vm1, %v2695_v45  ;;  %v152_v47 = vld [vmem:[#allocation5 + $0x98] sm:$0xff]  ;;  %v235_v7 = vand.u32 127, %v234_v4  ;;  %v2791_v8 = vshrl.u32 %v234_v4, 7  ;;  %vm245_vm2 = vcmask 130112  }
  0x3f   :  { %v2361_v38 = vpack.c.bf16 %v144_v37, %v143_v36  ;;  %v146_v40 = vld [vmem:[#allocation5 + $0x50] sm:$0xff]  ;;  %v147_v42 = vld [vmem:[#allocation5 + $0x60] sm:$0xff]  ;;  %481 = vmatprep.mubr.f32.mxu1 %v2695_v45  ;;  %v2369_v49 = vpack.c.bf16 %v152_v47, %v150_v46  ;;  %v154_v51 = vld [vmem:[#allocation5 + $0xa8] sm:$0xff]  ;;  %vm252_vm3 = vcmask 195712   ;;  %vm259_vm4 = vcmask 261312   ;;  %s2697_s26 = smov 3  }
  0x40   :  { %2359 = vmatpush3.bf16.msra.mxu0 %v2358_v34  ;;  %v2364_v41 = vpack.c.bf16 %v146_v40, %v145_v39  ;;  %v148_v43 = vld [vmem:[#allocation5 + $0x70] sm:$0xff]  ;;  %v149_v48 = vld [vmem:[#allocation5 + $0x80] sm:$0xff]  ;;  %v156_v52 = vld [vmem:[#allocation5 + $0xb8] sm:$0xff]  ;;  %v247_v12 = vadd.s32 4294967280, %v235_v7  ;;  %v254_v13 = vadd.s32 4294967272, %v235_v7  ;;  %v268_v20 = vadd.s32 4294967256, %v235_v7 }
  0x41   :  { %107 = vadd.xlane.f32.xlu1 %v106_v10  ;;  %2360 = vmatprep.subr.bf16.mxu0 %v2693_v35  ;;  %v2367_v44 = vpack.c.bf16 %v148_v43, %v147_v42  ;;  %v151_v50 = vld [vmem:[#allocation5 + $0x90] sm:$0xff]  ;;  %v2373_v54 = vpack.c.bf16 %v156_v52, %v154_v51  ;;  %v153_v55 = vld [vmem:[#allocation5 + $0xa0] sm:$0xff]  ;;  %v158_v57 = vld [vmem:[#allocation5 + $0xc8] sm:$0xff]  ;;  %vm266_vm5 = vcmask 326912   ;;  %vm273_vm6 = vcmask 392512   ;;  %s2698_s29 = smov 6  }
  0x42   :  { %83 = vadd.xlane.f32.xlu0 %v82_v11  ;;  %v2371_v53 = vpack.c.bf16 %v151_v50, %v149_v48  ;;  %v155_v56 = vld [vmem:[#allocation5 + $0xb0] sm:$0xff]  ;;  %2370 = vmatprep.subr.bf16.mxu1 %v2369_v49  ;;  %v160_v58 = vld [vmem:[#allocation5 + $0xd8] sm:$0xff]  ;;  %v157_v61 = vld [vmem:[#allocation5 + $0xc0] sm:$0xff]  ;;  %v240_v11 = vadd.s32 4294967288, %v235_v7  ;;  %v257_v21 = vsub.s32 %v254_v13, %v2791_v8  ;;  %v271_v34 = vsub.s32 %v268_v20, %v2791_v8  ;;  %s2699_s30 = smov 9   ;;  %s2700_s5 = smov [#allocation8]  }
  0x43   :  { %v2375_v59 = vpack.c.bf16 %v155_v56, %v153_v55  ;;  %v2377_v60 = vpack.c.bf16 %v160_v58, %v158_v57  ;;  %v159_v62 = vld [vmem:[#allocation5 + $0xd0] sm:$0xff]  ;;  %v282_v39 = vadd.s32 4294967240, %v235_v7  ;;  %vm280_vm7 = vcmask 458112   ;;  %v162_v20 = vld [vmem:[#allocation5 + $0xe8] sm:$0xff]  ;;  %s2056_s6 = sshll.u32 %s2700_s5, 4  ;;  %s2057_s6 = int_to_ptr.vmem [resolvable:$true] %s2056_s6 }
  0x44   :  { %2362 = vmatpush3.bf16.msra.mxu0 %v2361_v38  ;;  %2372 = vmatpush1.bf16.msra.mxu1 %v2371_v53  ;;  %v2379_v63 = vpack.c.bf16 %v159_v62, %v157_v61  ;;  %vm287_vm8 = vcmask 523712   ;;  %vm328_vm9 = vcmask 1041409   ;;  %vm682_vm10 = vcmask 1042432   ;;  %s2658_s7 = scalar_lea.vmem %s2057_s6, 32  ;;  %p2663_p11 = scmp.lt.s32.totalorder %s2057_s6, %s2057_s6 }
  0x45   :  { %110 = vadd.xlane.f32.xlu1 %v109_v14  ;;  %2363 = vmatprep.subr.bf16.mxu0 %v2693_v35  ;;  %v261_v14 = vadd.s32 4294967264, %v235_v7  ;;  %v285_v57 = vsub.s32 %v282_v39, %v2791_v8  ;;  %v186_v39 = vld [vmem:[#allocation5 + $0x250] sm:$0xff]  ;;  %vm678_vm11 = vcmask 23552   ;;  %vm1016_vm12 = vcmask 1043456   ;;  %p2659_p10 = scmp.ne.s32.totalorder %s2057_s6, %s2658_s7  ;;  %p2664_p12 = scmp.lt.s32.totalorder %s2658_s7, %s2658_s7 }
  0x46   :  { %86 = vadd.xlane.f32.xlu0 %v85_v15  ;;  %2374 = vmatprep.subr.bf16.mxu1 %v2373_v54  ;;  %v238_v15 = vsub.s32 %v235_v7, %v2791_v8  ;;  %vm1012_vm13 = vcmask 31744   ;;  %vm2044_vm14 = vcmask 48128   ;;  %vm2046_vm15 = vcmask 72704  }
  0x47   :  { %v264_v25 = vsub.s32 %v261_v14, %v2791_v8  ;;  %p2665_p13 = por %p2664_p12, %p2663_p11 }
  0x48   :  { %2365 = vmatpush3.bf16.msra.mxu0 %v2364_v41  ;;  %2376 = vmatpush1.bf16.msra.mxu1 %v2375_v59 }
  0x49   :  { %113 = vadd.xlane.f32.xlu1 %v112_v18  ;;  %2366 = vmatprep.subr.bf16.mxu0 %v2693_v35  ;;  %v243_v18 = vsub.s32 %v240_v11, %v2791_v8  ;;  %p2666_p0 = pnand %p2665_p13, %p2659_p10 }
  0x4a   :  { %89 = vadd.xlane.f32.xlu0 %v88_v19  ;;  %2378 = vmatprep.subr.bf16.mxu1 %v2377_v60  ;;  %v250_v19 = vsub.s32 %v247_v12, %v2791_v8 }
  0x4c   :  { %2368 = vmatpush3.bf16.msra.mxu0 %v2367_v44  ;;  %2380 = vmatpush1.bf16.msra.mxu1 %v2379_v63 }
  0x4d   :  { %116 = vadd.xlane.f32.xlu1 %v115_v22  ;;  %v275_v22 = vadd.s32 4294967248, %v235_v7 }
  0x4e   :  { %92 = vadd.xlane.f32.xlu0 %v91_v23 }
  0x4f   :  { %v278_v38 = vsub.s32 %v275_v22, %v2791_v8 }
  0x51   :  { %119 = vadd.xlane.f32.xlu1 %v118_v26 }
  0x52   :  { %95 = vadd.xlane.f32.xlu0 %v94_v27 }
  0x55   :  { %122 = vadd.xlane.f32.xlu1 %v121_v30 }
  0x56   :  { %98 = vadd.xlane.f32.xlu0 %v97_v31 }
  0xc6   :  { %v102_v0 = vpop.xlane.xlu1 %101 }
  0xc7   :  { %v78_v1 = vpop.xlane.xlu0 %77  ;;  %v133_v26 = vmul.f32 0.015625, %v102_v0 }
  0xc8   :  { %v125_v27 = vmul.f32 0.015625, %v78_v1 }
  0xc9   :  { %v292_v44 = vrot.slane %v133_v26, %v238_v15  ;;  %v181_v26 = vld [vmem:[#allocation5 + $0x200] sm:$0xff] }
  0xca   :  { %v105_v2 = vpop.xlane.xlu1 %104  ;;  %v239_v46 = vrot.slane %v125_v27, %v238_v15  ;;  %v182_v27 = vld [vmem:[#allocation5 + $0x210] sm:$0xff] }
  0xcb   :  { %v81_v3 = vpop.xlane.xlu0 %80  ;;  %v134_v23 = vmul.f32 0.015625, %v105_v2 }
  0xcc   :  { %v126_v24 = vmul.f32 0.015625, %v81_v3 }
  0xcd   :  { %v296_v40 = vrot.slane %v134_v23, %v243_v18  ;;  %v161_v23 = vld [vmem:[#allocation5 + $0xe0] sm:$0xff] }
  0xce   :  { %v108_v5 = vpop.xlane.xlu1 %107  ;;  %v244_v41 = vrot.slane %v126_v24, %v243_v18  ;;  %v163_v24 = vld [vmem:[#allocation5 + $0xf0] sm:$0xff] }
  0xcf   :  { %v84_v6 = vpop.xlane.xlu0 %83  ;;  %v135_v28 = vmul.f32 0.015625, %v108_v5  ;;  %v297_v58 = vsel %vm245_vm2, %v296_v40, %v292_v44  ;;  %v187_v44 = vld [vmem:[#allocation5 + $0x260] sm:$0xff] }
  0xd0   :  { %v127_v29 = vmul.f32 0.015625, %v84_v6  ;;  %v246_v59 = vsel %vm245_vm2, %v244_v41, %v239_v46  ;;  %v188_v46 = vld [vmem:[#allocation5 + $0x270] sm:$0xff] }
  0xd1   :  { %v301_v47 = vrot.slane %v135_v28, %v250_v19  ;;  %v165_v28 = vld [vmem:[#allocation5 + $0x100] sm:$0xff] }
  0xd2   :  { %v111_v9 = vpop.xlane.xlu1 %110  ;;  %v251_v48 = vrot.slane %v127_v29, %v250_v19  ;;  %v2385_v29 = vpack.c.bf16 %v182_v27, %v181_v26  ;;  %v203_v27 = vld [vmem:[#allocation5 + $0x360] sm:$0xff] }
  0xd3   :  { %v87_v10 = vpop.xlane.xlu0 %86  ;;  %v136_v32 = vmul.f32 0.015625, %v111_v9  ;;  %v302_v62 = vsel %vm252_vm3, %v301_v47, %v297_v58  ;;  %v192_v58 = vld [vmem:[#allocation5 + $0x2b0] sm:$0xff] }
  0xd4   :  { %v128_v33 = vmul.f32 0.015625, %v87_v10  ;;  %v253_v63 = vsel %vm252_vm3, %v251_v48, %v246_v59  ;;  %2386 = vmatprep.subr.bf16.mxu0 %v2385_v29  ;;  %v2397_v48 = vpack.c.bf16 %v188_v46, %v187_v44 }
  0xd5   :  { %v306_v51 = vrot.slane %v136_v32, %v257_v21  ;;  %v184_v32 = vld [vmem:[#allocation5 + $0x230] sm:$0xff] }
  0xd6   :  { %v114_v16 = vpop.xlane.xlu1 %113  ;;  %v258_v52 = vrot.slane %v128_v33, %v257_v21  ;;  %v164_v21 = vld [vmem:[#allocation5 + $0xf8] sm:$0xff] }
  0xd7   :  { %v90_v17 = vpop.xlane.xlu0 %89  ;;  %v137_v36 = vmul.f32 0.015625, %v114_v16  ;;  %v307_v4 = vsel %vm259_vm4, %v306_v51, %v302_v62  ;;  %v2381_v22 = vpack.c.bf16 %v164_v21, %v162_v20  ;;  %v189_v51 = vld [vmem:[#allocation5 + $0x280] sm:$0xff]  ;;  %v176_v62 = vld [vmem:[#allocation5 + $0x1b0] sm:$0xff] }
  0xd8   :  { %v129_v37 = vmul.f32 0.015625, %v90_v17  ;;  %v260_v5 = vsel %vm259_vm4, %v258_v52, %v253_v63  ;;  %v190_v52 = vld [vmem:[#allocation5 + $0x290] sm:$0xff]  ;;  %v193_v63 = vld [vmem:[#allocation5 + $0x2c0] sm:$0xff] }
  0xd9   :  { %v311_v55 = vrot.slane %v137_v36, %v264_v25  ;;  %2382 = vmatprep.subr.bf16.mxu1 %v2381_v22  ;;  %v167_v36 = vld [vmem:[#allocation5 + $0x120] sm:$0xff]  ;;  %v200_v22 = vld [vmem:[#allocation5 + $0x330] sm:$0xff] }
  0xda   :  { %v117_v30 = vpop.xlane.xlu1 %116  ;;  %v265_v56 = vrot.slane %v129_v37, %v264_v25  ;;  %v2383_v25 = vpack.c.bf16 %v163_v24, %v161_v23  ;;  %v168_v37 = vld [vmem:[#allocation5 + $0x130] sm:$0xff]  ;;  %v199_v20 = vld [vmem:[#allocation5 + $0x320] sm:$0xff] }
  0xdb   :  { %v93_v31 = vpop.xlane.xlu0 %92  ;;  %v138_v42 = vmul.f32 0.015625, %v117_v30  ;;  %v312_v9 = vsel %vm266_vm5, %v311_v55, %v307_v4  ;;  %v166_v30 = vld [vmem:[#allocation5 + $0x110] sm:$0xff]  ;;  %v2391_v40 = vpack.c.bf16 %v168_v37, %v167_v36  ;;  %v173_v55 = vld [vmem:[#allocation5 + $0x180] sm:$0xff]  ;;  %v2421_v23 = vpack.c.bf16 %v200_v22, %v199_v20  ;;  %v648_v22 = vld [vmem:[#allocation7 + $0x78] sm:$0xff] }
  0xdc   :  { %v130_v43 = vmul.f32 0.015625, %v93_v31  ;;  %v267_v10 = vsel %vm266_vm5, %v265_v56, %v260_v5  ;;  %2384 = vmatpush1.bf16.msra.mxu1 %v2383_v25  ;;  %v183_v31 = vld [vmem:[#allocation5 + $0x220] sm:$0xff]  ;;  %v2387_v33 = vpack.c.bf16 %v166_v30, %v165_v28  ;;  %v174_v56 = vld [vmem:[#allocation5 + $0x190] sm:$0xff]  ;;  %v406_v37 = vsub.s32 0, %v2791_v8 }
  0xdd   :  { %v316_v60 = vrot.slane %v138_v42, %v271_v34  ;;  %2417 = vmatprep.subr.bf16.mxu1 %v2693_v35  ;;  %v169_v42 = vld [vmem:[#allocation5 + $0x140] sm:$0xff]  ;;  %v2403_v59 = vpack.c.bf16 %v174_v56, %v173_v55  ;;  %v202_v25 = vld [vmem:[#allocation5 + $0x350] sm:$0xff]  ;;  %v652_v55 = vld [vmem:[#allocation7 + $0x98] sm:$0x7] }
  0xde   :  { %v120_v49 = vpop.xlane.xlu1 %119  ;;  %v272_v61 = vrot.slane %v130_v43, %v271_v34  ;;  %v2389_v34 = vpack.c.bf16 %v184_v32, %v183_v31  ;;  %v170_v43 = vld [vmem:[#allocation5 + $0x150] sm:$0xff]  ;;  %v201_v24 = vld [vmem:[#allocation5 + $0x340] sm:$0xff] }
  0xdf   :  { %v96_v50 = vpop.xlane.xlu0 %95  ;;  %v139_v53 = vmul.f32 0.015625, %v120_v49  ;;  %v317_v11 = vsel %vm273_vm6, %v316_v60, %v312_v9  ;;  %v2395_v47 = vpack.c.bf16 %v170_v43, %v169_v42  ;;  %v171_v49 = vld [vmem:[#allocation5 + $0x160] sm:$0xff]  ;;  %v2424_v26 = vpack.c.bf16 %v202_v25, %v201_v24  ;;  %v204_v28 = vld [vmem:[#allocation5 + $0x370] sm:$0xff] }
  0xe0   :  { %v131_v54 = vmul.f32 0.015625, %v96_v50  ;;  %v274_v12 = vsel %vm273_vm6, %v272_v61, %v267_v10  ;;  %v172_v50 = vld [vmem:[#allocation5 + $0x170] sm:$0xff]  ;;  %v175_v61 = vld [vmem:[#allocation5 + $0x1a0] sm:$0xff]  ;;  %v2427_v29 = vpack.c.bf16 %v204_v28, %v203_v27 }
  0xe1   :  { %v321_v0 = vrot.slane %v139_v53, %v278_v38  ;;  %v2399_v53 = vpack.c.bf16 %v172_v50, %v171_v49  ;;  %v177_v9 = vld [vmem:[#allocation5 + $0x1c0] sm:$0xff]  ;;  %v178_v10 = vld [vmem:[#allocation5 + $0x1d0] sm:$0xff] }
  0xe2   :  { %v279_v1 = vrot.slane %v131_v54, %v278_v38  ;;  %v123_v2 = vpop.xlane.xlu1 %122  ;;  %v185_v38 = vld [vmem:[#allocation5 + $0x240] sm:$0xff]  ;;  %v2401_v54 = vpack.c.bf16 %v190_v52, %v189_v51  ;;  %v206_v31 = vld [vmem:[#allocation5 + $0x390] sm:$0xff] }
  0xe3   :  { %v99_v3 = vpop.xlane.xlu0 %98  ;;  %v140_v6 = vmul.f32 0.015625, %v123_v2  ;;  %v322_v15 = vsel %vm280_vm7, %v321_v0, %v317_v11  ;;  %v2393_v41 = vpack.c.bf16 %v186_v39, %v185_v38  ;;  %v194_v0 = vld [vmem:[#allocation5 + $0x2d0] sm:$0xff]  ;;  %v2411_v11 = vpack.c.bf16 %v178_v10, %v177_v9  ;;  %v205_v30 = vld [vmem:[#allocation5 + $0x380] sm:$0xff] }
  0xe4   :  { %v132_v7 = vmul.f32 0.015625, %v99_v3  ;;  %v281_v16 = vsel %vm280_vm7, %v279_v1, %v274_v12  ;;  %v2407_v1 = vpack.c.bf16 %v176_v62, %v175_v61  ;;  %v2409_v2 = vpack.c.bf16 %v194_v0, %v193_v63  ;;  %v213_v3 = vld [vmem:[#allocation5 + $0x400] ss:$0 sm:$0xff]  ;;  %v215_v38 = vld [vmem:[#allocation5 + $0x410] ss:$8 sm:$0x3] }
  0xe5   :  { %v326_v13 = vrot.slane %v140_v6, %v285_v57  ;;  %v195_v12 = vld [vmem:[#allocation5 + $0x2e0] sm:$0xff]  ;;  %v2430_v32 = vpack.c.bf16 %v206_v31, %v205_v30  ;;  %v410_v39 = vsub.s32 1, %v2791_v8  ;;  %v210_v50 = vld [vmem:[#allocation5 + $0x3d0] sm:$0xff] }
  0xe6   :  { %v286_v14 = vrot.slane %v132_v7, %v285_v57  ;;  %v191_v57 = vld [vmem:[#allocation5 + $0x2a0] sm:$0xff]  ;;  %v651_v56 = vld [vmem:[#allocation7 + $0x90] sm:$0x7] }
  0xe7   :  { %v327_v18 = vsel %vm287_vm8, %v326_v13, %v322_v15  ;;  %v2405_v60 = vpack.c.bf16 %v192_v58, %v191_v57  ;;  %v196_v13 = vld [vmem:[#allocation5 + $0x2f0] sm:$0xff]  ;;  %v179_v15 = vld [vmem:[#allocation5 + $0x1e0] sm:$0xff]  ;;  %v2836_v58 = vld [vmem:[#allocation7 + $0x88] sm:$0x7] }
  0xe8   :  { %v288_v17 = vsel %vm287_vm8, %v286_v14, %v281_v16  ;;  %v2413_v14 = vpack.c.bf16 %v196_v13, %v195_v12  ;;  %v180_v16 = vld [vmem:[#allocation5 + $0x1f0] sm:$0xff]  ;;  %v209_v49 = vld [vmem:[#allocation5 + $0x3c0] sm:$0xff] }
  0xe9   :  { %v329_v19 = vsel %vm328_vm9, %v327_v18, %v288_v17  ;;  %v2415_v17 = vpack.c.bf16 %v180_v16, %v179_v15  ;;  %v197_v18 = vld [vmem:[#allocation5 + $0x300] sm:$0xff]  ;;  %v2436_v51 = vpack.c.bf16 %v210_v50, %v209_v49  ;;  %v635_v63 = vld [vmem:[#allocation7 + $0x10] sm:$0xff] }
  0xea   :  { %2224 = vmatmul.mubr.msk.f32.vlgmr.msra.gmra.mrb[0].mxu0 %vm75_vm0, %v329_v19  ;;  %v198_v19 = vld [vmem:[#allocation5 + $0x310] sm:$0xff]  ;;  %v211_v52 = vld [vmem:[#allocation5 + $0x3e0] sm:$0xff] }
  0xeb   :  { %2388 = vmatpush3.bf16.msra.mxu0 %v2387_v33  ;;  %v2418_v21 = vpack.c.bf16 %v198_v19, %v197_v18  ;;  %v207_v33 = vld [vmem:[#allocation5 + $0x3a0] sm:$0xff]  ;;  %v643_v12 = vld [vmem:[#allocation7 + $0x50] sm:$0xff] }
  0xec   :  { %2390 = vmatprep.subr.bf16.mxu0 %v2389_v34  ;;  %v208_v34 = vld [vmem:[#allocation5 + $0x3b0] sm:$0xff]  ;;  %v632_v57 = vld [vmem:[%s3071_s1] sm:$0x3]  ;;  %s2696_s1 = smov 64  }
  0xed   :  { %v2433_v36 = vpack.c.bf16 %v208_v34, %v207_v33  ;;  %v633_v61 = vld [vmem:[#allocation7] sm:$0xff]  ;;  %v647_v25 = vld [vmem:[#allocation7 + $0x70] sm:$0xff] }
  0xee   :  { %v2844_v0 = vpack.c.bf16 %v635_v63, %v633_v61  ;;  %v216_v15 = vld [vmem:[#allocation5 + $0x420] ss:$0 sm:$0xff]  ;;  %v659_v63 = vld [vmem:[#allocation7 + $0xf0] sm:$0xff] }
  0xef   :  { %2392 = vmatpush3.bf16.msra.mxu0 %v2391_v40  ;;  %v407_v40 = vrot.slane %v215_v38, %v406_v37  ;;  %v2861_v20 = vld [vmem:[#allocation7 + $0x80] sm:$0x7] }
  0xf0   :  { %2394 = vmatprep.subr.bf16.mxu0 %v2393_v41  ;;  %v411_v41 = vrot.slane %v215_v38, %v410_v39  ;;  %v645_v24 = vld [vmem:[#allocation7 + $0x60] sm:$0xff] }
  0xf1   :  { %v654_v38 = vld [vmem:[#allocation7 + $0xa0] ss:$8 sm:$0x3] }
  0xf2   :  { %v675_v50 = vrot.slane %v654_v38, %v410_v39  ;;  %v660_v39 = vld [vmem:[#allocation7 + $0x100] sm:$0xff] }
  0xf3   :  { %2396 = vmatpush3.bf16.msra.mxu0 %v2395_v47 }
  0xf4   :  { %2398 = vmatprep.subr.bf16.mxu0 %v2397_v48 }
  0xf7   :  { %2400 = vmatpush3.bf16.msra.mxu0 %v2399_v53  ;;  %v212_v53 = vld [vmem:[#allocation5 + $0x3f0] sm:$0xff] }
  0xf8   :  { %2402 = vmatprep.subr.bf16.mxu0 %v2401_v54  ;;  %v2439_v54 = vpack.c.bf16 %v212_v53, %v211_v52 }
  0xfb   :  { %2404 = vmatpush3.bf16.msra.mxu0 %v2403_v59  ;;  %v634_v59 = vld [vmem:[#allocation7 + $0x8] sm:$0xff] }
  0xfc   :  { %2406 = vmatprep.subr.bf16.mxu0 %v2405_v60  ;;  %v636_v60 = vld [vmem:[#allocation7 + $0x18] sm:$0xff] }
  0xfd   :  { %v2842_v62 = vpack.c.bf16 %v636_v60, %v634_v59  ;;  %v657_v59 = vld [vmem:[#allocation7 + $0xd0] sm:$0xff]  ;;  %v658_v60 = vld [vmem:[#allocation7 + $0xe0] sm:$0xff] }
  0xfe   :  { %v2897_v8 = vpack.c.bf16 %v659_v63, %v658_v60 }
  0xff   :  { %2408 = vmatpush3.bf16.msra.mxu0 %v2407_v1  ;;  %v638_v1 = vld [vmem:[#allocation7 + $0x28] sm:$0xff] }
 0x100   :  { %2410 = vmatprep.subr.bf16.mxu0 %v2409_v2  ;;  %v640_v2 = vld [vmem:[#allocation7 + $0x38] sm:$0xff] }
 0x103   :  { %2412 = vmatpush3.bf16.msra.mxu0 %v2411_v11  ;;  %v641_v11 = vld [vmem:[#allocation7 + $0x40] sm:$0xff] }
 0x104   :  { %2414 = vmatprep.subr.bf16.mxu0 %v2413_v14  ;;  %v2857_v13 = vpack.c.bf16 %v643_v12, %v641_v11 }
 0x107   :  { %2416 = vmatpush3.bf16.msra.mxu0 %v2415_v17 }
 0x108   :  { %2068 = vmatprep.subr.msk.mxu0 %vm682_vm10, %v652_v55 }
 0x1bd   :  { %v398_v4 = vpop.f32.mrb[0].mxu0 }
 0x1be   :  { %v399_v5 = vadd.f32 %v398_v4, %v213_v3  ;;  %v2225_v6 = vpop.f32.mrb[1].mxu0  ;;  %v637_v3 = vld [vmem:[#allocation7 + $0x20] sm:$0xff]  ;;  %v2848_v4 = vpack.c.bf16 %v640_v2, %v638_v1  ;;  %v661_v1 = vld [vmem:[#allocation7 + $0x110] sm:$0xff] }
 0x1bf   :  { %v642_v6 = vld [vmem:[#allocation7 + $0x48] sm:$0xff]  ;;  %v2901_v2 = vpack.c.bf16 %v661_v1, %v660_v39 }
 0x1c0   :  { %v402_v7 = vmax.f32 %v399_v5, 0.0  ;;  %v639_v5 = vld [vmem:[#allocation7 + $0x30] sm:$0xff] }
 0x1c1   :  { %v2851_v9 = vpack.c.bf16 %v639_v5, %v637_v3  ;;  %v662_v5 = vld [vmem:[#allocation7 + $0x120] sm:$0xff] }
 0x1c2   :  { %2067 = vmatmul.mubr.msk.f32.vlgmr.msra.gmra.mrb[0].mxu1 %vm75_vm0, %v402_v7  ;;  %v644_v7 = vld [vmem:[#allocation7 + $0x58] sm:$0xff] }
 0x1c3   :  { %2258 = vmatprep.mubr.msk.f32.mxu1 %vm2694_vm1, %v2695_v45  ;;  %2419 = vmatpush3.bf16.msra.mxu1 %v2418_v21  ;;  %v2854_v10 = vpack.c.bf16 %v644_v7, %v642_v6  ;;  %v646_v21 = vld [vmem:[#allocation7 + $0x68] sm:$0xff]  ;;  %v663_v6 = vld [vmem:[#allocation7 + $0x130] sm:$0xff] }
 0x1c4   :  { %2420 = vmatprep.subr.bf16.mxu1 %v2693_v35  ;;  %v2906_v7 = vpack.c.bf16 %v663_v6, %v662_v5 }
 0x1c7   :  { %2422 = vmatpush3.bf16.msra.mxu1 %v2421_v23  ;;  %v2870_v23 = vpack.c.bf16 %v648_v22, %v646_v21  ;;  %v2926_v21 = vld [vmem:[#allocation7 + $0x140] ss:$0 sm:$0xff] }
 0x1c8   :  { %2423 = vmatprep.subr.bf16.mxu1 %v2693_v35 }
 0x1cb   :  { %2425 = vmatpush3.bf16.msra.mxu1 %v2424_v26  ;;  %v2872_v26 = vpack.c.bf16 %v647_v25, %v645_v24 }
 0x1cc   :  { %2426 = vmatprep.subr.bf16.mxu1 %v2693_v35 }
 0x1cf   :  { %2428 = vmatpush3.bf16.msra.mxu1 %v2427_v29  ;;  %v217_v29 = vld [vmem:[#allocation5 + $0x430] ss:$0 sm:$0xff] }
 0x1d0   :  { %2429 = vmatprep.subr.bf16.mxu1 %v2693_v35 }
 0x1d3   :  { %2431 = vmatpush3.bf16.msra.mxu1 %v2430_v32 }
 0x1d4   :  { %2432 = vmatprep.subr.bf16.mxu1 %v2693_v35 }
 0x1d7   :  { %2434 = vmatpush3.bf16.msra.mxu1 %v2433_v36 }
 0x1d8   :  { %2435 = vmatprep.subr.bf16.mxu1 %v2693_v35 }
 0x1db   :  { %2437 = vmatpush3.bf16.msra.mxu1 %v2436_v51  ;;  %v2888_v51 = vld [vmem:[#allocation7 + $0xb8] ss:$0 sm:$0xff] }
 0x1dc   :  { %2438 = vmatprep.subr.bf16.mxu1 %v2693_v35 }
 0x1df   :  { %2440 = vmatpush3.bf16.msra.mxu1 %v2439_v54 }
 0x1e0   :  { %2071 = vmatprep.subr.msk.mxu1 %vm682_vm10, %v2836_v58 }
 0x295   :  { %v483_v42 = vpop.f32.mrb[0].mxu1 }
 0x296   :  { %v484_v43 = vadd.f32 %v483_v42, %v407_v40  ;;  %v485_v44 = vpop.f32.mrb[1].mxu1  ;;  %v671_v40 = vrot.slane %v654_v38, %v406_v37 }
 0x297   :  { %v486_v46 = vadd.f32 %v485_v44, %v411_v41 }
 0x298   :  { %v488_v48 = vmax.f32 %v484_v43, 0.0 }
 0x299   :  { %v489_v47 = vmax.f32 %v486_v46, 0.0 }
 0x29b   :  { %554 = vmatprep.mubr.f32.mxu0 %v489_v47 }
 0x29c   :  { %555 = vmatmul.mubr.f32.vlgmr.msra.gmra.mrb[2].mxu0 %v488_v48 }
 0x29d   :  { %753 = vmatprep.mubr.f32.mxu0 %v2695_v45  ;;  %2069 = vmatpush1.msk.msra.mxu0 %vm682_vm10, %v651_v56 }
 0x29e   :  { %2442 = vmatprep.subr.bf16.mxu0 %v2842_v62 }
 0x2a0   :  { %2070 = vmatmul.mubr.msk.f32.vlgmr.msra.gmra.mrb[4].mxu0 %vm678_vm11, %v632_v57  ;;  %v656_v57 = vld [vmem:[#allocation7 + $0xc0] sm:$0xff] }
 0x2a1   :  { %907 = vmatprep.mubr.f32.mxu0 %v2695_v45  ;;  %2444 = vmatpush1.bf16.msra.mxu0 %v2844_v0  ;;  %v2894_v61 = vpack.c.bf16 %v657_v59, %v656_v57 }
 0x2a2   :  { %2446 = vmatprep.subr.bf16.mxu0 %v2848_v4 }
 0x2a5   :  { %2448 = vmatpush1.bf16.msra.mxu0 %v2851_v9 }
 0x2a6   :  { %2450 = vmatprep.subr.bf16.mxu0 %v2854_v10 }
 0x2a9   :  { %2452 = vmatpush1.bf16.msra.mxu0 %v2857_v13 }
 0x2aa   :  { %2454 = vmatprep.subr.bf16.mxu0 %v2870_v23 }
 0x2ad   :  { %2456 = vmatpush1.bf16.msra.mxu0 %v2872_v26 }
 0x2ae   :  { %2280 = vmatprep.subr.mxu0 %v2695_v45 }
 0x36f   :  { %v2143_v14 = vpop.f32.mrb[2].mxu0 }
 0x370   :  { %v2144_v16 = vpop.f32.mrb[3].mxu0 }
 0x371   :  { %v2145_v17 = vadd.f32 %v2144_v16, %v2143_v14 }
 0x373   :  { %v557_v18 = vadd.f32 %v2145_v17, %v216_v15  ;;  %v755_v27 = vpop.f32.mrb[4].mxu0 }
 0x374   :  { %v757_v28 = vpop.f32.mrb[5].mxu0  ;;  %v2883_v41 = vadd.f32 %v755_v27, %v671_v40 }
 0x375   :  { %v560_v19 = vmax.f32 %v557_v18, 0.0  ;;  %v2890_v52 = vadd.f32 %v757_v28, %v675_v50  ;;  %v2945_v28 = vld [vmem:[#allocation7 + $0x160] ss:$0 sm:$0xff] }
 0x377   :  { %2259 = vmatmul.mubr.f32.vlgmr.msra.gmra.mrb[2].mxu1 %v560_v19  ;;  %v2921_v19 = vld [vmem:[#allocation7 + $0x150] sm:$0xf] }
 0x378   :  { %2072 = vmatpush1.msk.msra.mxu1 %vm682_vm10, %v2861_v20  ;;  %833 = vmatprep.mubr.f32.mxu1 %v2695_v45 }
 0x379   :  { %2457 = vmatprep.subr.bf16.mxu1 %v2693_v35 }
 0x37b   :  { %834 = vmatmul.mubr.f32.vlgmr.msra.gmra.mrb[4].mxu1 %v2695_v45 }
 0x37c   :  { %2277 = vmatprep.mubr.msk.f32.mxu1 %vm2694_vm1, %v2695_v45  ;;  %2459 = vmatpush3.bf16.msra.mxu1 %v2894_v61 }
 0x37d   :  { %2460 = vmatprep.subr.bf16.mxu1 %v2693_v35 }
 0x380   :  { %2462 = vmatpush3.bf16.msra.mxu1 %v2897_v8 }
 0x381   :  { %2463 = vmatprep.subr.bf16.mxu1 %v2693_v35 }
 0x384   :  { %2465 = vmatpush3.bf16.msra.mxu1 %v2901_v2 }
 0x385   :  { %2466 = vmatprep.subr.bf16.mxu1 %v2693_v35 }
 0x388   :  { %2468 = vmatpush3.bf16.msra.mxu1 %v2906_v7 }
 0x389   :  { %2078 = vmatprep.subr.msk.mxu1 %vm682_vm10, %v2836_v58 }
 0x44a   :  { %v627_v30 = vpop.f32.mrb[2].mxu1 }
 0x44b   :  { %v628_v31 = vadd.f32 %v627_v30, %v217_v29  ;;  %v2260_v32 = vpop.f32.mrb[3].mxu1 }
 0x44d   :  { %v631_v33 = vmax.f32 %v628_v31, 0.0 }
 0x44e   :  { %v835_v34 = vpop.f32.mrb[4].mxu1 }
 0x44f   :  { %931 = vrot.lane.b32.xlu1 %v631_v33, %s2696_s1  ;;  %2073 = vmatmul.mubr.msk.f32.vlgmr.msra.gmra.mrb[6].mxu0 %vm75_vm0, %v631_v33  ;;  %v837_v36 = vpop.f32.mrb[5].mxu1  ;;  %v836_v42 = vadd.f32 %v835_v34, %v2883_v41 }
 0x450   :  { %2282 = vmatprep.mubr.msk.f32.mxu0 %vm2694_vm1, %v2695_v45  ;;  %v838_v54 = vadd.f32 %v837_v36, %v2890_v52  ;;  %2281 = vmatpush3.msk.msra.mxu0 %vm1016_vm12, %v2921_v19 }
 0x451   :  { %2470 = vmatprep.subr.bf16.mxu0 %v2842_v62 }
 0x4c1   :  { %v932_v12 = vpop.permute.xlu1 %931 }
 0x522   :  { %v909_v43 = vpop.f32.mrb[6].mxu0 }
 0x523   :  { %v914_v44 = vadd.f32 %v909_v43, %v836_v42  ;;  %v911_v46 = vpop.f32.mrb[7].mxu0 }
 0x524   :  { %v921_v37 = vadd.f32 %v911_v46, %v2888_v51 }
 0x525   :  { %v2074_v47 = vmul.f32 -1.442695, %v914_v44 }
 0x527   :  { %2568 = vpow2.f32 %v2074_v47 }
 0x531   :  { %v2569_v48 = vpop.eup %2568 }
 0x532   :  { %v918_v49 = vadd.f32 1.0, %v2569_v48 }
 0x534   :  { %2570 = vrcp.f32 %v918_v49 }
 0x53e   :  { %v2571_v53 = vpop.eup %2570 }
 0x53f   :  { %v922_v55 = vmul.f32 %v2571_v53, %v921_v37  ;;  %v925_v11 = vsub.f32 1.0, %v2571_v53  ;;  %v934_v15 = vmul.f32 %v2571_v53, %v932_v12 }
 0x541   :  { %v923_v56 = vadd.f32 %v922_v55, %v838_v54 }
 0x543   :  { %2572 = vtanh.f32 %v923_v56 }
 0x54d   :  { %v2573_v3 = vpop.eup %2572 }
 0x54e   :  { %927 = vrot.lane.b32.xlu0 %v2573_v3, %s2696_s1 }
 0x5c0   :  { %v928_v14 = vpop.permute.xlu0 %927 }
 0x5c1   :  { %v930_v16 = vmul.f32 %v928_v14, %v925_v11 }
 0x5c3   :  { %v2912_v17 = vadd.f32 %v934_v15, %v930_v16 }
 0x5c5   :  { %937 = vrot.lane.b32.xlu1 %v2912_v17, %s2696_s1 }
 0x637   :  { %v938_v18 = vpop.permute.xlu1 %937 }
 0x638   :  { %2278 = vmatmul.mubr.msk.f32.vlgmr.msra.gmra.mrb[6].mxu1 %vm75_vm0, %v938_v18 }
 0x639   :  { %2079 = vmatpush1.msk.msra.mxu1 %vm682_vm10, %v2861_v20  ;;  %1158 = vmatprep.mubr.f32.mxu1 %v2695_v45 }
 0x63a   :  { %2485 = vmatprep.subr.bf16.mxu1 %v2693_v35 }
 0x70b   :  { %v1007_v22 = vpop.f32.mrb[6].mxu1 }
 0x70c   :  { %v1008_v24 = vadd.f32 %v1007_v22, %v2926_v21  ;;  %v2279_v25 = vpop.f32.mrb[7].mxu1 }
 0x70e   :  { %v1011_v27 = vmax.f32 %v1008_v24, 0.0 }
 0x710   :  { %2283 = vmatmul.mubr.msk.f32.vlgmr.msra.gmra.mrb[8].mxu0 %vm1012_vm13, %v1011_v27 }
 0x711   :  { %2472 = vmatpush1.bf16.msra.mxu0 %v2844_v0  ;;  %1229 = vmatprep.mubr.f32.mxu0 %v2695_v45 }
 0x712   :  { %2474 = vmatprep.subr.bf16.mxu0 %v2848_v4 }
 0x715   :  { %2476 = vmatpush1.bf16.msra.mxu0 %v2851_v9 }
 0x716   :  { %2478 = vmatprep.subr.bf16.mxu0 %v2854_v10 }
 0x719   :  { %2480 = vmatpush1.bf16.msra.mxu0 %v2857_v13 }
 0x71a   :  { %2482 = vmatprep.subr.bf16.mxu0 %v2870_v23 }
 0x71d   :  { %2484 = vmatpush1.bf16.msra.mxu0 %v2872_v26 }
 0x71e   :  { %2304 = vmatprep.subr.mxu0 %v2695_v45 }
 0x720   :  { %2081 = vmatmul.mubr.msk.f32.vlgmr.msra.gmra.mrb[10].mxu0 %vm75_vm0, %v938_v18 }
 0x721   :  { %2305 = vmatpush3.msk.msra.mxu0 %vm1016_vm12, %v2921_v19  ;;  %2306 = vmatprep.mubr.msk.f32.mxu0 %vm2694_vm1, %v2695_v45 }
 0x722   :  { %2498 = vmatprep.subr.bf16.mxu0 %v2842_v62 }
 0x7e3   :  { %v1086_v29 = vpop.f32.mrb[8].mxu0 }
 0x7e4   :  { %v2948_v30 = vadd.f32 %v1086_v29, %v2945_v28  ;;  %v2284_v31 = vpop.f32.mrb[9].mxu0 }
 0x7e6   :  { %2080 = vmatmul.mubr.msk.f32.vlgmr.msra.gmra.mrb[8].mxu1 %vm678_vm11, %v2948_v30 }
 0x7e7   :  { %2487 = vmatpush3.bf16.msra.mxu1 %v2894_v61  ;;  %2301 = vmatprep.mubr.msk.f32.mxu1 %vm2694_vm1, %v2695_v45 }
 0x7e8   :  { %2488 = vmatprep.subr.bf16.mxu1 %v2693_v35 }
 0x7eb   :  { %2490 = vmatpush3.bf16.msra.mxu1 %v2897_v8 }
 0x7ec   :  { %2491 = vmatprep.subr.bf16.mxu1 %v2693_v35 }
 0x7ef   :  { %2493 = vmatpush3.bf16.msra.mxu1 %v2901_v2 }
 0x7f0   :  { %2494 = vmatprep.subr.bf16.mxu1 %v2693_v35 }
 0x7f3   :  { %v1231_v32 = vpop.f32.mrb[10].mxu0  ;;  %2496 = vmatpush3.bf16.msra.mxu1 %v2906_v7 }
 0x7f4   :  { %v1233_v33 = vpop.f32.mrb[11].mxu0  ;;  %2086 = vmatprep.subr.msk.mxu1 %vm682_vm10, %v2836_v58 }
 0x7f5   :  { %v1243_v46 = vadd.f32 %v1233_v33, %v2888_v51 }
 0x8b9   :  { %v1160_v34 = vpop.f32.mrb[8].mxu1 }
 0x8ba   :  { %v1161_v36 = vadd.f32 %v1160_v34, %v2883_v41  ;;  %v1162_v38 = vpop.f32.mrb[9].mxu1 }
 0x8bb   :  { %v1163_v48 = vadd.f32 %v1162_v38, %v2890_v52 }
 0x8bc   :  { %v1236_v40 = vadd.f32 %v1231_v32, %v1161_v36 }
 0x8be   :  { %v2082_v42 = vmul.f32 -1.442695, %v1236_v40 }
 0x8c0   :  { %2574 = vpow2.f32 %v2082_v42 }
 0x8ca   :  { %v2575_v43 = vpop.eup %2574 }
 0x8cb   :  { %v1240_v44 = vadd.f32 1.0, %v2575_v43 }
 0x8cd   :  { %2576 = vrcp.f32 %v1240_v44 }
 0x8d7   :  { %v2577_v47 = vpop.eup %2576 }
 0x8d8   :  { %v1244_v49 = vmul.f32 %v2577_v47, %v1243_v46  ;;  %v1247_v53 = vsub.f32 1.0, %v2577_v47  ;;  %v1253_v55 = vmul.f32 %v2577_v47, %v2912_v17 }
 0x8da   :  { %v1245_v50 = vadd.f32 %v1244_v49, %v1163_v48 }
 0x8dc   :  { %2578 = vtanh.f32 %v1245_v50 }
 0x8e6   :  { %v2579_v37 = vpop.eup %2578 }
 0x8e7   :  { %1249 = vrot.lane.b32.xlu1 %v2579_v37, %s2696_s1 }
 0x959   :  { %v1250_v54 = vpop.permute.xlu1 %1249 }
 0x95a   :  { %v1252_v56 = vmul.f32 %v1250_v54, %v1247_v53 }
 0x95c   :  { %v1254_v57 = vadd.f32 %v1253_v55, %v1252_v56 }
 0x95e   :  { %1256 = vrot.lane.b32.xlu0 %v1254_v57, %s2696_s1 }
 0x9d0   :  { %v1257_v59 = vpop.permute.xlu0 %1256 }
 0x9d1   :  { %2302 = vmatmul.mubr.msk.f32.vlgmr.msra.gmra.mrb[10].mxu1 %vm75_vm0, %v1257_v59 }
 0x9d2   :  { %2087 = vmatpush1.msk.msra.mxu1 %vm682_vm10, %v2861_v20  ;;  %1472 = vmatprep.mubr.f32.mxu1 %v2695_v45 }
 0x9d3   :  { %2513 = vmatprep.subr.bf16.mxu1 %v2693_v35 }
 0xaa4   :  { %v1326_v60 = vpop.f32.mrb[10].mxu1 }
 0xaa5   :  { %v1327_v63 = vadd.f32 %v1326_v60, %v2926_v21  ;;  %v2303_v39 = vpop.f32.mrb[11].mxu1 }
 0xaa7   :  { %v1330_v1 = vmax.f32 %v1327_v63, 0.0 }
 0xaa9   :  { %2307 = vmatmul.mubr.msk.f32.vlgmr.msra.gmra.mrb[12].mxu0 %vm1012_vm13, %v1330_v1 }
 0xaaa   :  { %2500 = vmatpush1.bf16.msra.mxu0 %v2844_v0  ;;  %1543 = vmatprep.mubr.f32.mxu0 %v2695_v45 }
 0xaab   :  { %2502 = vmatprep.subr.bf16.mxu0 %v2848_v4 }
 0xaae   :  { %2504 = vmatpush1.bf16.msra.mxu0 %v2851_v9 }
 0xaaf   :  { %2506 = vmatprep.subr.bf16.mxu0 %v2854_v10 }
 0xab2   :  { %2508 = vmatpush1.bf16.msra.mxu0 %v2857_v13 }
 0xab3   :  { %2510 = vmatprep.subr.bf16.mxu0 %v2870_v23 }
 0xab6   :  { %2512 = vmatpush1.bf16.msra.mxu0 %v2872_v26 }
 0xab7   :  { %2328 = vmatprep.subr.mxu0 %v2695_v45 }
 0xab9   :  { %2089 = vmatmul.mubr.msk.f32.vlgmr.msra.gmra.mrb[14].mxu0 %vm75_vm0, %v1257_v59 }
 0xaba   :  { %2329 = vmatpush3.msk.msra.mxu0 %vm1016_vm12, %v2921_v19  ;;  %2330 = vmatprep.mubr.msk.f32.mxu0 %vm2694_vm1, %v2695_v45 }
 0xabb   :  { %2526 = vmatprep.subr.bf16.mxu0 %v2842_v62 }
 0xb7c   :  { %v1400_v3 = vpop.f32.mrb[12].mxu0 }
 0xb7d   :  { %v1401_v5 = vadd.f32 %v1400_v3, %v2945_v28  ;;  %v2308_v6 = vpop.f32.mrb[13].mxu0 }
 0xb7f   :  { %v2993_v11 = vadd.f32 %v1401_v5, %v2948_v30 }
 0xb81   :  { %2088 = vmatmul.mubr.msk.f32.vlgmr.msra.gmra.mrb[12].mxu1 %vm678_vm11, %v2993_v11 }
 0xb82   :  { %2515 = vmatpush3.bf16.msra.mxu1 %v2894_v61  ;;  %2325 = vmatprep.mubr.msk.f32.mxu1 %vm2694_vm1, %v2695_v45 }
 0xb83   :  { %2516 = vmatprep.subr.bf16.mxu1 %v2693_v35 }
 0xb86   :  { %2518 = vmatpush3.bf16.msra.mxu1 %v2897_v8 }
 0xb87   :  { %2519 = vmatprep.subr.bf16.mxu1 %v2693_v35 }
 0xb8a   :  { %2521 = vmatpush3.bf16.msra.mxu1 %v2901_v2 }
 0xb8b   :  { %2522 = vmatprep.subr.bf16.mxu1 %v2693_v35 }
 0xb8c   :  { %v1545_v62 = vpop.f32.mrb[14].mxu0 }
 0xb8d   :  { %v1547_v12 = vpop.f32.mrb[15].mxu0 }
 0xb8e   :  { %2524 = vmatpush3.bf16.msra.mxu1 %v2906_v7  ;;  %v1557_v25 = vadd.f32 %v1547_v12, %v2888_v51 }
 0xb8f   :  { %2094 = vmatprep.subr.msk.mxu1 %vm682_vm10, %v2836_v58 }
 0xc54   :  { %v1474_v14 = vpop.f32.mrb[12].mxu1 }
 0xc55   :  { %v1475_v15 = vadd.f32 %v1474_v14, %v2883_v41  ;;  %v1476_v16 = vpop.f32.mrb[13].mxu1 }
 0xc56   :  { %v1477_v29 = vadd.f32 %v1476_v16, %v2890_v52 }
 0xc57   :  { %v1550_v17 = vadd.f32 %v1545_v62, %v1475_v15 }
 0xc59   :  { %v2090_v18 = vmul.f32 -1.442695, %v1550_v17 }
 0xc5b   :  { %2580 = vpow2.f32 %v2090_v18 }
 0xc65   :  { %v2581_v22 = vpop.eup %2580 }
 0xc66   :  { %v1554_v24 = vadd.f32 1.0, %v2581_v22 }
 0xc68   :  { %2582 = vrcp.f32 %v1554_v24 }
 0xc72   :  { %v2583_v27 = vpop.eup %2582 }
 0xc73   :  { %v1558_v31 = vmul.f32 %v2583_v27, %v1557_v25  ;;  %v1561_v58 = vsub.f32 1.0, %v2583_v27  ;;  %v1567_v36 = vmul.f32 %v2583_v27, %v1254_v57 }
 0xc75   :  { %v1559_v32 = vadd.f32 %v1558_v31, %v1477_v29 }
 0xc77   :  { %2584 = vtanh.f32 %v1559_v32 }
 0xc81   :  { %v2585_v33 = vpop.eup %2584 }
 0xc82   :  { %1563 = vrot.lane.b32.xlu1 %v2585_v33, %s2696_s1 }
 0xcf4   :  { %v1564_v34 = vpop.permute.xlu1 %1563 }
 0xcf5   :  { %v1566_v38 = vmul.f32 %v1564_v34, %v1561_v58 }
 0xcf7   :  { %v1568_v40 = vadd.f32 %v1567_v36, %v1566_v38 }
 0xcf9   :  { %1570 = vrot.lane.b32.xlu0 %v1568_v40, %s2696_s1 }
 0xd6b   :  { %v1571_v42 = vpop.permute.xlu0 %1570 }
 0xd6c   :  { %2326 = vmatmul.mubr.msk.f32.vlgmr.msra.gmra.mrb[14].mxu1 %vm75_vm0, %v1571_v42 }
 0xd6d   :  { %2095 = vmatpush1.msk.msra.mxu1 %vm682_vm10, %v2861_v20  ;;  %1786 = vmatprep.mubr.f32.mxu1 %v2695_v45 }
 0xd6e   :  { %2541 = vmatprep.subr.bf16.mxu1 %v2693_v35 }
 0xe3f   :  { %v1640_v43 = vpop.f32.mrb[14].mxu1 }
 0xe40   :  { %v1641_v44 = vadd.f32 %v1640_v43, %v2926_v21  ;;  %v2327_v46 = vpop.f32.mrb[15].mxu1 }
 0xe42   :  { %v1644_v47 = vmax.f32 %v1641_v44, 0.0 }
 0xe44   :  { %2331 = vmatmul.mubr.msk.f32.vlgmr.msra.gmra.mrb[16].mxu0 %vm1012_vm13, %v1644_v47 }
 0xe45   :  { %2528 = vmatpush1.bf16.msra.mxu0 %v2844_v0  ;;  %1857 = vmatprep.mubr.f32.mxu0 %v2695_v45 }
 0xe46   :  { %2530 = vmatprep.subr.bf16.mxu0 %v2848_v4 }
 0xe49   :  { %2532 = vmatpush1.bf16.msra.mxu0 %v2851_v9 }
 0xe4a   :  { %2534 = vmatprep.subr.bf16.mxu0 %v2854_v10 }
 0xe4d   :  { %2536 = vmatpush1.bf16.msra.mxu0 %v2857_v13 }
 0xe4e   :  { %2538 = vmatprep.subr.bf16.mxu0 %v2870_v23 }
 0xe51   :  { %2540 = vmatpush1.bf16.msra.mxu0 %v2872_v26 }
 0xe52   :  { %2352 = vmatprep.subr.mxu0 %v2695_v45 }
 0xe54   :  { %2097 = vmatmul.mubr.msk.f32.vlgmr.msra.gmra.mrb[18].mxu0 %vm75_vm0, %v1571_v42 }
 0xe55   :  { %2353 = vmatpush3.msk.msra.mxu0 %vm1016_vm12, %v2921_v19  ;;  %2354 = vmatprep.mubr.msk.f32.mxu0 %vm2694_vm1, %v2695_v45 }
 0xf17   :  { %v1714_v0 = vpop.f32.mrb[16].mxu0 }
 0xf18   :  { %v1715_v4 = vadd.f32 %v1714_v0, %v2945_v28  ;;  %v2332_v9 = vpop.f32.mrb[17].mxu0 }
 0xf1a   :  { %v1718_v10 = vadd.f32 %v1715_v4, %v2993_v11 }
 0xf1c   :  { %2096 = vmatmul.mubr.msk.f32.vlgmr.msra.gmra.mrb[16].mxu1 %vm678_vm11, %v1718_v10 }
 0xf1d   :  { %2543 = vmatpush3.bf16.msra.mxu1 %v2894_v61  ;;  %2349 = vmatprep.mubr.msk.f32.mxu1 %vm2694_vm1, %v2695_v45 }
 0xf1e   :  { %2544 = vmatprep.subr.bf16.mxu1 %v2693_v35 }
 0xf21   :  { %2546 = vmatpush3.bf16.msra.mxu1 %v2897_v8 }
 0xf22   :  { %2547 = vmatprep.subr.bf16.mxu1 %v2693_v35 }
 0xf25   :  { %2549 = vmatpush3.bf16.msra.mxu1 %v2901_v2 }
 0xf26   :  { %2550 = vmatprep.subr.bf16.mxu1 %v2693_v35 }
 0xf27   :  { %v1859_v13 = vpop.f32.mrb[18].mxu0 }
 0xf28   :  { %v1861_v20 = vpop.f32.mrb[19].mxu0 }
 0xf29   :  { %2552 = vmatpush3.bf16.msra.mxu1 %v2906_v7  ;;  %v1871_v8 = vadd.f32 %v1861_v20, %v2888_v51 }
 0xfef   :  { %v1788_v23 = vpop.f32.mrb[16].mxu1 }
 0xff0   :  { %v1789_v26 = vadd.f32 %v1788_v23, %v2883_v41  ;;  %v1790_v61 = vpop.f32.mrb[17].mxu1 }
 0xff1   :  { %v1791_v2 = vadd.f32 %v1790_v61, %v2890_v52 }
 0xff2   :  { %v1864_v19 = vadd.f32 %v1859_v13, %v1789_v26 }
 0xff4   :  { %v2098_v45 = vmul.f32 -1.442695, %v1864_v19 }
 0xff6   :  { %2586 = vpow2.f32 %v2098_v45 }
0x1000   :  { %v2587_v48 = vpop.eup %2586 }
0x1001   :  { %v1868_v49 = vadd.f32 1.0, %v2587_v48 }
0x1003   :  { %2588 = vrcp.f32 %v1868_v49 }
0x100d   :  { %v2589_v50 = vpop.eup %2588 }
0x100e   :  { %v1872_v35 = vmul.f32 %v2589_v50, %v1871_v8  ;;  %v1875_v41 = vsub.f32 1.0, %v2589_v50  ;;  %v1881_v54 = vmul.f32 %v2589_v50, %v1568_v40 }
0x1010   :  { %v1873_v37 = vadd.f32 %v1872_v35, %v1791_v2 }
0x1012   :  { %2590 = vtanh.f32 %v1873_v37 }
0x101c   :  { %v2591_v53 = vpop.eup %2590 }
0x101d   :  { %1877 = vrot.lane.b32.xlu1 %v2591_v53, %s2696_s1 }
0x1021   :  { %2033 = vrot.lane.b32.xlu1 %v2993_v11, %s2697_s26 }
0x108f   :  { %v1878_v7 = vpop.permute.xlu1 %1877 }
0x1090   :  { %v1880_v55 = vmul.f32 %v1878_v7, %v1875_v41 }
0x1092   :  { %v1882_v56 = vadd.f32 %v1881_v54, %v1880_v55 }
0x1093   :  { %v2034_v5 = vpop.permute.xlu1 %2033 }
0x1094   :  { %1884 = vrot.lane.b32.xlu0 %v1882_v56, %s2696_s1 }
0x1098   :  { %2036 = vrot.lane.b32.xlu0 %v1718_v10, %s2698_s29 }
0x1106   :  { %v1885_v51 = vpop.permute.xlu0 %1884 }
0x1107   :  { %2350 = vmatmul.mubr.msk.f32.vlgmr.msra.gmra.mrb[18].mxu1 %vm75_vm0, %v1885_v51  ;;  %vm2048_vm0 = vcmask 91136  }
0x110a   :  { %v2037_v6 = vpop.permute.xlu0 %2036 }
0x11da   :  { %v1954_v52 = vpop.f32.mrb[18].mxu1 }
0x11db   :  { %v1955_v57 = vadd.f32 %v1954_v52, %v2926_v21  ;;  %v2351_v59 = vpop.f32.mrb[19].mxu1  ;;  %v2043_v21 = vsel %vm678_vm11, %v2948_v30, %v2034_v5 }
0x11dc   :  { %v2045_v11 = vsel %vm2044_vm14, %v2043_v21, %v2037_v6 }
0x11dd   :  { %v1958_v60 = vmax.f32 %v1955_v57, 0.0 }
0x11df   :  { %2355 = vmatmul.mubr.msk.f32.vlgmr.msra.gmra.mrb[20].mxu0 %vm1012_vm13, %v1958_v60 }
0x12b2   :  { %v2028_v63 = vpop.f32.mrb[20].mxu0 }
0x12b3   :  { %v2029_v39 = vadd.f32 %v2028_v63, %v2945_v28  ;;  %v2356_v1 = vpop.f32.mrb[21].mxu0 }
0x12b5   :  { %v2032_v3 = vadd.f32 %v2029_v39, %v1718_v10 }
0x12b7   :  { %2040 = vrot.lane.b32.xlu1 %v2032_v3, %s2699_s30 }
0x1329   :  { %v2041_v62 = vpop.permute.xlu1 %2040 }
0x132a   :  { %v2047_v12 = vsel %vm2046_vm15, %v2045_v11, %v2041_v62 }
0x132b   :  { %2049 = vst.msk [vmem:[#allocation8] sm:$0x3] %vm2048_vm0, %v2047_v12 }
0x132c   :  { %2669 = shalt.err (!%p2666_p0)
}
0x132d   :  { %s2670_s10 = scalar_lea.hbm %s3074_s4, 32 }
0x132e   :  { %p2671_p1 = scmp.ne.s32.totalorder %s3074_s4, %s2670_s10  ;;  %p2674_p2 = scmp.lt.u32.totalorder %s2670_s10, %s3074_s4 }
0x1330   :  { %p2676_p3 = pnand %p2674_p2, %p2671_p1 }
0x1332   :  { %2679 = shalt.err (!%p2676_p3)
}
0x1333   :  { %2059 = dma.vmem_to_hbm [thread:$0]  %s2057_s6, 32, %s3074_s4, [#allocation4]  }
0x1334   :  { %2684 = dma.done.wait [#allocation4], 32  }
0x1335   :  { %2685 = vsyncadd [#allocation4], 4294967264 }
0x1336   :  { %2063 = vsyncpa [#allocation3], 1 }
0x1337   :  { %2064 = vsyncpa [#allocation6], 1 }
0x1338   :  { %2065 = vsyncpa [#allocation4], 1 }

</bundles_post_ra>
